<compile_context>
chip_gen: v7x
topology: tpu7x:2x2x1
jax: 0.10.0
libtpu: 0.0.40
codegen_flags: <defaults>
</compile_context>

<pallas_src>
import functools

import jax
import jax.numpy as jnp
from jax.experimental import pallas as pl
from jax.experimental.pallas import tpu as pltpu


# ----------------------------------------------------------------------------
# Fused Pallas kernel: both views, both GCN layers, pooling, both FC heads
# ----------------------------------------------------------------------------

def _encoder_kernel(
    x_ref, a1_ref, a2_ref, pool_ref,
    gw1_ref, gw2_ref, gvec_ref,
    m1w1_ref, m1w2_ref, m1w3_ref, m1vec_ref,
    m2w1_ref, m2w2_ref, m2w3_ref, m2vec_ref,
    h_ref, g_ref,
    *, hidden,
):
    H = hidden
    f32 = jnp.float32

    x = x_ref[...]                     # (N, F)
    a1 = a1_ref[...]                   # (N, N)  sym-norm adjacency  (aug1)
    a2 = a2_ref[...]                   # (N, N)  PPR diffusion       (aug2)
    pool = pool_ref[...]               # (G, N)  one-hot pooling

    gvec = gvec_ref[...]               # (3, 2H): [b1_cat; b2_cat; alpha_cat]
    b1 = gvec[0:1, :]
    b2 = gvec[1:2, :]
    alpha = gvec[2:3, :]

    # ---- GCN layer 1: both views lane-concatenated (hidden axis) ----------
    xw = jnp.dot(x, gw1_ref[...], preferred_element_type=f32)        # (N, 2H)
    p1 = jnp.dot(a1, xw[:, :H], preferred_element_type=f32)          # (N, H)
    p2 = jnp.dot(a2, xw[:, H:], preferred_element_type=f32)          # (N, H)
    zc = jnp.concatenate([p1, p2], axis=1) + b1
    zc = jnp.where(zc > 0.0, zc, alpha * zc)                          # PReLU

    # ---- GCN layer 2: block-diagonal weight -> one MXU push ---------------
    zw = jnp.dot(zc, gw2_ref[...], preferred_element_type=f32)       # (N, 2H)
    p1 = jnp.dot(a1, zw[:, :H], preferred_element_type=f32)
    p2 = jnp.dot(a2, zw[:, H:], preferred_element_type=f32)
    zc = jnp.concatenate([p1, p2], axis=1) + b2
    zc = jnp.where(zc > 0.0, zc, alpha * zc)                          # (N, 2H)

    # ---- global_add_pool for both views in one matmul ----------------------
    gc = jnp.dot(pool, zc, preferred_element_type=f32)                # (G, 2H)

    # ---- batch the shared FC heads: row-stack the two views ---------------
    z_all = jnp.concatenate([zc[:, :H], zc[:, H:]], axis=0)           # (2N, H)
    g_all = jnp.concatenate([gc[:, :H], gc[:, H:]], axis=0)           # (2G, H)

    def fc_head(v, w1s, w2, w3, vec):
        # w1s = [W1 | Ws] (H, 2H); vec rows: [b1|bs], [b2|pad], [b3|pad]
        t = jnp.dot(v, w1s, preferred_element_type=f32) + vec[0:1, :]
        h = jnp.maximum(t[:, :H], 0.0)
        shortcut = t[:, H:]
        h = jnp.maximum(
            jnp.dot(h, w2, preferred_element_type=f32) + vec[1:2, :H], 0.0)
        h = jnp.maximum(
            jnp.dot(h, w3, preferred_element_type=f32) + vec[2:3, :H], 0.0)
        return h + shortcut

    h_ref[...] = fc_head(z_all, m1w1_ref[...], m1w2_ref[...],
                         m1w3_ref[...], m1vec_ref[...])               # (2N, H)
    g_ref[...] = fc_head(g_all, m2w1_ref[...], m2w2_ref[...],
                         m2w3_ref[...], m2vec_ref[...])               # (2G, H)


def _full_spec(arr):
    ndim = arr.ndim
    return pl.BlockSpec(arr.shape, lambda *_: (0,) * ndim)


def encoder_fused(x, a1, a2, pool_mat, packed, hidden):
    n = x.shape[0]
    g = pool_mat.shape[0]
    args = (x, a1, a2, pool_mat) + tuple(packed)
    kernel = functools.partial(_encoder_kernel, hidden=hidden)
    h_all, g_all = pl.pallas_call(
        kernel,
        out_shape=(
            jax.ShapeDtypeStruct((2 * n, hidden), jnp.float32),
            jax.ShapeDtypeStruct((2 * g, hidden), jnp.float32),
        ),
        in_specs=[_full_spec(v) for v in args],
        out_specs=(
            pl.BlockSpec((2 * n, hidden), lambda: (0, 0)),
            pl.BlockSpec((2 * g, hidden), lambda: (0, 0)),
        ),
        compiler_params=pltpu.CompilerParams(vmem_limit_bytes=32 * 1024 * 1024),
    )(*args)
    return h_all[:n], h_all[n:], g_all[:g], g_all[g:]


# ----------------------------------------------------------------------------
# Graph / augmentation glue (plain JAX)
# ----------------------------------------------------------------------------

def sym_norm_adj(edge_index, n):
    """GCNConv-style symmetric normalization with self loops (dense)."""
    a = jnp.zeros((n, n), jnp.float32)
    a = a.at[edge_index[0], edge_index[1]].set(1.0)
    a = jnp.maximum(a, a.T)                       # undirected
    a = a + jnp.eye(n, dtype=jnp.float32)         # self loops
    deg = a.sum(axis=1)
    d_inv_sqrt = 1.0 / jnp.sqrt(deg)
    return d_inv_sqrt[:, None] * a * d_inv_sqrt[None, :]


def ppr_diffusion(a_norm, alpha=0.2):
    """aug2: dense PPR diffusion S = alpha * (I - (1-alpha) * A_norm)^-1."""
    n = a_norm.shape[0]
    # TODO(synk): exact dense inverse kept in JAX glue; at non-toy N replace
    # with a truncated power-series PPR driven by the same tiled Pallas matmul.
    return alpha * jnp.linalg.inv(jnp.eye(n, dtype=jnp.float32)
                                  - (1.0 - alpha) * a_norm)


# ----------------------------------------------------------------------------
# Parameter construction + packing for the fused kernel
# ----------------------------------------------------------------------------

def make_params(key, in_dim, hidden_dim, num_layers=2):
    keys = jax.random.split(key, 64)
    k = iter(range(64))

    def lin(kk, fan_in, fan_out):
        w = 0.1 * jax.random.normal(keys[kk], (fan_in, fan_out), jnp.float32)
        b = 0.01 * jax.random.normal(keys[kk + 32], (1, fan_out), jnp.float32)
        return w, b

    def gconv():
        layers = []
        for i in range(num_layers):
            fin = in_dim if i == 0 else hidden_dim
            layers.append(lin(next(k), fin, hidden_dim))
        alpha = jnp.full((1, hidden_dim), 0.25, jnp.float32)   # PReLU init
        return layers, alpha

    def fc():
        return (lin(next(k), hidden_dim, hidden_dim)
                + lin(next(k), hidden_dim, hidden_dim)
                + lin(next(k), hidden_dim, hidden_dim)
                + lin(next(k), hidden_dim, hidden_dim))        # shortcut last

    return {"gcn1": gconv(), "gcn2": gconv(), "mlp1": fc(), "mlp2": fc()}


def pack_params(params, hidden):
    """Concatenate / block-diagonalize weights so both views share matmuls."""
    H = hidden
    (layers_a, alpha_a) = params["gcn1"]
    (layers_b, alpha_b) = params["gcn2"]
    (w1a, b1a), (w2a, b2a) = layers_a
    (w1b, b1b), (w2b, b2b) = layers_b

    gw1 = jnp.concatenate([w1a, w1b], axis=1)                    # (F, 2H)
    gw2 = jnp.zeros((2 * H, 2 * H), jnp.float32)
    gw2 = gw2.at[:H, :H].set(w2a).at[H:, H:].set(w2b)            # block-diag
    gvec = jnp.concatenate([
        jnp.concatenate([b1a, b1b], axis=1),
        jnp.concatenate([b2a, b2b], axis=1),
        jnp.concatenate([alpha_a, alpha_b], axis=1),
    ], axis=0)                                                    # (3, 2H)

    def pack_mlp(p):
        w1, b1, w2, b2, w3, b3, ws, bs = p
        w1s = jnp.concatenate([w1, ws], axis=1)                   # (H, 2H)
        vec = jnp.concatenate([
            jnp.concatenate([b1, bs], axis=1),
            jnp.concatenate([b2, jnp.zeros_like(b2)], axis=1),
            jnp.concatenate([b3, jnp.zeros_like(b3)], axis=1),
        ], axis=0)                                                # (3, 2H)
        return w1s, w2, w3, vec

    m1 = pack_mlp(params["mlp1"])
    m2 = pack_mlp(params["mlp2"])
    return (gw1, gw2, gvec) + m1 + m2


# ----------------------------------------------------------------------------
# Encoder forward
# ----------------------------------------------------------------------------

@functools.partial(jax.jit, static_argnames=("n_graphs", "hidden"))
def encoder_forward(params, x, edge_index, batch, *, n_graphs, hidden):
    n = x.shape[0]
    # aug1 = Identity, aug2 = PPR diffusion
    a_norm = sym_norm_adj(edge_index, n)
    a_ppr = ppr_diffusion(a_norm, alpha=0.2)
    pool_mat = (batch[None, :] == jnp.arange(n_graphs)[:, None]).astype(jnp.float32)
    packed = pack_params(params, hidden)
    return encoder_fused(x, a_norm, a_ppr, pool_mat, packed, hidden)


# ----------------------------------------------------------------------------
# main
# ----------------------------------------------------------------------------

if __name__ == "__main__":
    N_NODES = 32          # 2 graphs x 16 nodes
    N_GRAPHS = 2
    IN_DIM = 8
    HIDDEN = 32

    key = jax.random.PRNGKey(0)
    k_x, k_p = jax.random.split(key)

    x = jax.random.normal(k_x, (N_NODES, IN_DIM), jnp.float32)

    # Deterministic edges: a ring inside each of the two 16-node graphs.
    src, dst = [], []
    for g in range(N_GRAPHS):
        off = g * 16
        for i in range(16):
            src.append(off + i)
            dst.append(off + (i + 1) % 16)
    edge_index = jnp.array([src, dst], dtype=jnp.int32)                 # [2, 32]
    batch = jnp.repeat(jnp.arange(N_GRAPHS, dtype=jnp.int32), 16)       # [32]

    params = make_params(k_p, IN_DIM, HIDDEN)

    h1, h2, g1, g2 = encoder_forward(params, x, edge_index, batch,
                                     n_graphs=N_GRAPHS, hidden=HIDDEN)
    jax.block_until_ready((h1, h2, g1, g2))

    assert h1.shape == (N_NODES, HIDDEN) and h2.shape == (N_NODES, HIDDEN)
    assert g1.shape == (N_GRAPHS, HIDDEN) and g2.shape == (N_GRAPHS, HIDDEN)
    print("KERNEL_OK")
</pallas_src>

<mosaic_0001>
module attributes {stable_mosaic.version = 11 : i64} {
  func.func @_encoder_kernel(%arg0: memref<32x8xf32, #tpu.memory_space<vmem>>, %arg1: memref<32x32xf32, #tpu.memory_space<vmem>>, %arg2: memref<32x32xf32, #tpu.memory_space<vmem>>, %arg3: memref<2x32xf32, #tpu.memory_space<vmem>>, %arg4: memref<8x64xf32, #tpu.memory_space<vmem>>, %arg5: memref<64x64xf32, #tpu.memory_space<vmem>>, %arg6: memref<3x64xf32, #tpu.memory_space<vmem>>, %arg7: memref<32x64xf32, #tpu.memory_space<vmem>>, %arg8: memref<32x32xf32, #tpu.memory_space<vmem>>, %arg9: memref<32x32xf32, #tpu.memory_space<vmem>>, %arg10: memref<3x64xf32, #tpu.memory_space<vmem>>, %arg11: memref<32x64xf32, #tpu.memory_space<vmem>>, %arg12: memref<32x32xf32, #tpu.memory_space<vmem>>, %arg13: memref<32x32xf32, #tpu.memory_space<vmem>>, %arg14: memref<3x64xf32, #tpu.memory_space<vmem>>, %arg15: memref<64x32xf32, #tpu.memory_space<vmem>>, %arg16: memref<4x32xf32, #tpu.memory_space<vmem>>) attributes {dimension_semantics = [], scalar_prefetch = 0 : i64, scratch_operands = 0 : i64, tpu.core_type = #tpu.core_type<tc>} {
    %c0 = arith.constant 0 : index
    %c0_0 = arith.constant 0 : index
    %0 = vector.load %arg0[%c0, %c0_0] : memref<32x8xf32, #tpu.memory_space<vmem>>, vector<32x8xf32>
    %c0_1 = arith.constant 0 : index
    %c0_2 = arith.constant 0 : index
    %1 = vector.load %arg1[%c0_1, %c0_2] : memref<32x32xf32, #tpu.memory_space<vmem>>, vector<32x32xf32>
    %c0_3 = arith.constant 0 : index
    %c0_4 = arith.constant 0 : index
    %2 = vector.load %arg2[%c0_3, %c0_4] : memref<32x32xf32, #tpu.memory_space<vmem>>, vector<32x32xf32>
    %c0_5 = arith.constant 0 : index
    %c0_6 = arith.constant 0 : index
    %3 = vector.load %arg3[%c0_5, %c0_6] : memref<2x32xf32, #tpu.memory_space<vmem>>, vector<2x32xf32>
    %c0_7 = arith.constant 0 : index
    %c0_8 = arith.constant 0 : index
    %4 = vector.load %arg6[%c0_7, %c0_8] : memref<3x64xf32, #tpu.memory_space<vmem>>, vector<3x64xf32>
    %5 = vector.extract_strided_slice %4 {offsets = [0, 0], sizes = [1, 64], strides = [1, 1]} : vector<3x64xf32> to vector<1x64xf32>
    %6 = vector.extract_strided_slice %4 {offsets = [1, 0], sizes = [1, 64], strides = [1, 1]} : vector<3x64xf32> to vector<1x64xf32>
    %7 = vector.extract_strided_slice %4 {offsets = [2, 0], sizes = [1, 64], strides = [1, 1]} : vector<3x64xf32> to vector<1x64xf32>
    %c0_9 = arith.constant 0 : index
    %c0_10 = arith.constant 0 : index
    %8 = vector.load %arg4[%c0_9, %c0_10] : memref<8x64xf32, #tpu.memory_space<vmem>>, vector<8x64xf32>
    %cst = arith.constant dense<0.000000e+00> : vector<32x64xf32>
    %9 = tpu.matmul %0, %8, %cst {dimension_numbers = #tpu.dot_dimension_numbers<[1], [0], [0], [1], [0, 0, 1, 1], [], []>} : vector<32x8xf32>, vector<8x64xf32>, vector<32x64xf32> -> vector<32x64xf32>
    %10 = vector.extract_strided_slice %9 {offsets = [0, 0], sizes = [32, 32], strides = [1, 1]} : vector<32x64xf32> to vector<32x32xf32>
    %cst_11 = arith.constant dense<0.000000e+00> : vector<32x32xf32>
    %11 = tpu.matmul %1, %10, %cst_11 {dimension_numbers = #tpu.dot_dimension_numbers<[1], [0], [0], [1], [0, 0, 1, 1], [], []>} : vector<32x32xf32>, vector<32x32xf32>, vector<32x32xf32> -> vector<32x32xf32>
    %12 = vector.extract_strided_slice %9 {offsets = [0, 32], sizes = [32, 32], strides = [1, 1]} : vector<32x64xf32> to vector<32x32xf32>
    %cst_12 = arith.constant dense<0.000000e+00> : vector<32x32xf32>
    %13 = tpu.matmul %2, %12, %cst_12 {dimension_numbers = #tpu.dot_dimension_numbers<[1], [0], [0], [1], [0, 0, 1, 1], [], []>} : vector<32x32xf32>, vector<32x32xf32>, vector<32x32xf32> -> vector<32x32xf32>
    %14 = tpu.concatenate %11, %13 in 1 : vector<32x32xf32>, vector<32x32xf32> -> vector<32x64xf32>
    %15 = vector.broadcast %5 : vector<1x64xf32> to vector<32x64xf32>
    %16 = arith.addf %14, %15 : vector<32x64xf32>
    %cst_13 = arith.constant 0.000000e+00 : f32
    %17 = vector.broadcast %cst_13 : f32 to vector<32x64xf32>
    %18 = arith.cmpf ogt, %16, %17 : vector<32x64xf32>
    %19 = vector.broadcast %7 : vector<1x64xf32> to vector<32x64xf32>
    %20 = arith.mulf %19, %16 : vector<32x64xf32>
    %21 = arith.select %18, %16, %20 : vector<32x64xi1>, vector<32x64xf32>
    %c0_14 = arith.constant 0 : index
    %c0_15 = arith.constant 0 : index
    %22 = vector.load %arg5[%c0_14, %c0_15] : memref<64x64xf32, #tpu.memory_space<vmem>>, vector<64x64xf32>
    %cst_16 = arith.constant dense<0.000000e+00> : vector<32x64xf32>
    %23 = tpu.matmul %21, %22, %cst_16 {dimension_numbers = #tpu.dot_dimension_numbers<[1], [0], [0], [1], [0, 0, 1, 1], [], []>} : vector<32x64xf32>, vector<64x64xf32>, vector<32x64xf32> -> vector<32x64xf32>
    %24 = vector.extract_strided_slice %23 {offsets = [0, 0], sizes = [32, 32], strides = [1, 1]} : vector<32x64xf32> to vector<32x32xf32>
    %cst_17 = arith.constant dense<0.000000e+00> : vector<32x32xf32>
    %25 = tpu.matmul %1, %24, %cst_17 {dimension_numbers = #tpu.dot_dimension_numbers<[1], [0], [0], [1], [0, 0, 1, 1], [], []>} : vector<32x32xf32>, vector<32x32xf32>, vector<32x32xf32> -> vector<32x32xf32>
    %26 = vector.extract_strided_slice %23 {offsets = [0, 32], sizes = [32, 32], strides = [1, 1]} : vector<32x64xf32> to vector<32x32xf32>
    %cst_18 = arith.constant dense<0.000000e+00> : vector<32x32xf32>
    %27 = tpu.matmul %2, %26, %cst_18 {dimension_numbers = #tpu.dot_dimension_numbers<[1], [0], [0], [1], [0, 0, 1, 1], [], []>} : vector<32x32xf32>, vector<32x32xf32>, vector<32x32xf32> -> vector<32x32xf32>
    %28 = tpu.concatenate %25, %27 in 1 : vector<32x32xf32>, vector<32x32xf32> -> vector<32x64xf32>
    %29 = vector.broadcast %6 : vector<1x64xf32> to vector<32x64xf32>
    %30 = arith.addf %28, %29 : vector<32x64xf32>
    %cst_19 = arith.constant 0.000000e+00 : f32
    %31 = vector.broadcast %cst_19 : f32 to vector<32x64xf32>
    %32 = arith.cmpf ogt, %30, %31 : vector<32x64xf32>
    %33 = vector.broadcast %7 : vector<1x64xf32> to vector<32x64xf32>
    %34 = arith.mulf %33, %30 : vector<32x64xf32>
    %35 = arith.select %32, %30, %34 : vector<32x64xi1>, vector<32x64xf32>
    %cst_20 = arith.constant dense<0.000000e+00> : vector<2x64xf32>
    %36 = tpu.matmul %3, %35, %cst_20 {dimension_numbers = #tpu.dot_dimension_numbers<[1], [0], [0], [1], [0, 0, 1, 1], [], []>} : vector<2x32xf32>, vector<32x64xf32>, vector<2x64xf32> -> vector<2x64xf32>
    %37 = vector.extract_strided_slice %35 {offsets = [0, 0], sizes = [32, 32], strides = [1, 1]} : vector<32x64xf32> to vector<32x32xf32>
    %38 = vector.extract_strided_slice %35 {offsets = [0, 32], sizes = [32, 32], strides = [1, 1]} : vector<32x64xf32> to vector<32x32xf32>
    %39 = tpu.concatenate %37, %38 in 0 : vector<32x32xf32>, vector<32x32xf32> -> vector<64x32xf32>
    %40 = vector.extract_strided_slice %36 {offsets = [0, 0], sizes = [2, 32], strides = [1, 1]} : vector<2x64xf32> to vector<2x32xf32>
    %41 = vector.extract_strided_slice %36 {offsets = [0, 32], sizes = [2, 32], strides = [1, 1]} : vector<2x64xf32> to vector<2x32xf32>
    %42 = tpu.concatenate %40, %41 in 0 : vector<2x32xf32>, vector<2x32xf32> -> vector<4x32xf32>
    %c0_21 = arith.constant 0 : index
    %c0_22 = arith.constant 0 : index
    %43 = vector.load %arg7[%c0_21, %c0_22] : memref<32x64xf32, #tpu.memory_space<vmem>>, vector<32x64xf32>
    %c0_23 = arith.constant 0 : index
    %c0_24 = arith.constant 0 : index
    %44 = vector.load %arg8[%c0_23, %c0_24] : memref<32x32xf32, #tpu.memory_space<vmem>>, vector<32x32xf32>
    %c0_25 = arith.constant 0 : index
    %c0_26 = arith.constant 0 : index
    %45 = vector.load %arg9[%c0_25, %c0_26] : memref<32x32xf32, #tpu.memory_space<vmem>>, vector<32x32xf32>
    %c0_27 = arith.constant 0 : index
    %c0_28 = arith.constant 0 : index
    %46 = vector.load %arg10[%c0_27, %c0_28] : memref<3x64xf32, #tpu.memory_space<vmem>>, vector<3x64xf32>
    %cst_29 = arith.constant dense<0.000000e+00> : vector<64x64xf32>
    %47 = tpu.matmul %39, %43, %cst_29 {dimension_numbers = #tpu.dot_dimension_numbers<[1], [0], [0], [1], [0, 0, 1, 1], [], []>} : vector<64x32xf32>, vector<32x64xf32>, vector<64x64xf32> -> vector<64x64xf32>
    %48 = vector.extract_strided_slice %46 {offsets = [0, 0], sizes = [1, 64], strides = [1, 1]} : vector<3x64xf32> to vector<1x64xf32>
    %49 = vector.broadcast %48 : vector<1x64xf32> to vector<64x64xf32>
    %50 = arith.addf %47, %49 : vector<64x64xf32>
    %51 = vector.extract_strided_slice %50 {offsets = [0, 0], sizes = [64, 32], strides = [1, 1]} : vector<64x64xf32> to vector<64x32xf32>
    %cst_30 = arith.constant 0.000000e+00 : f32
    %52 = vector.broadcast %cst_30 : f32 to vector<64x32xf32>
    %53 = arith.maximumf %51, %52 : vector<64x32xf32>
    %54 = vector.extract_strided_slice %50 {offsets = [0, 32], sizes = [64, 32], strides = [1, 1]} : vector<64x64xf32> to vector<64x32xf32>
    %cst_31 = arith.constant dense<0.000000e+00> : vector<64x32xf32>
    %55 = tpu.matmul %53, %44, %cst_31 {dimension_numbers = #tpu.dot_dimension_numbers<[1], [0], [0], [1], [0, 0, 1, 1], [], []>} : vector<64x32xf32>, vector<32x32xf32>, vector<64x32xf32> -> vector<64x32xf32>
    %56 = vector.extract_strided_slice %46 {offsets = [1, 0], sizes = [1, 32], strides = [1, 1]} : vector<3x64xf32> to vector<1x32xf32>
    %57 = vector.broadcast %56 : vector<1x32xf32> to vector<64x32xf32>
    %58 = arith.addf %55, %57 : vector<64x32xf32>
    %cst_32 = arith.constant 0.000000e+00 : f32
    %59 = vector.broadcast %cst_32 : f32 to vector<64x32xf32>
    %60 = arith.maximumf %58, %59 : vector<64x32xf32>
    %cst_33 = arith.constant dense<0.000000e+00> : vector<64x32xf32>
    %61 = tpu.matmul %60, %45, %cst_33 {dimension_numbers = #tpu.dot_dimension_numbers<[1], [0], [0], [1], [0, 0, 1, 1], [], []>} : vector<64x32xf32>, vector<32x32xf32>, vector<64x32xf32> -> vector<64x32xf32>
    %62 = vector.extract_strided_slice %46 {offsets = [2, 0], sizes = [1, 32], strides = [1, 1]} : vector<3x64xf32> to vector<1x32xf32>
    %63 = vector.broadcast %62 : vector<1x32xf32> to vector<64x32xf32>
    %64 = arith.addf %61, %63 : vector<64x32xf32>
    %cst_34 = arith.constant 0.000000e+00 : f32
    %65 = vector.broadcast %cst_34 : f32 to vector<64x32xf32>
    %66 = arith.maximumf %64, %65 : vector<64x32xf32>
    %67 = arith.addf %66, %54 : vector<64x32xf32>
    %c0_35 = arith.constant 0 : index
    %c0_36 = arith.constant 0 : index
    %68 = vector.load %arg15[%c0_35, %c0_36] : memref<64x32xf32, #tpu.memory_space<vmem>>, vector<64x32xf32>
    tpu.vector_store %arg15[%c0_35, %c0_36], %67 {strides = array<i32>} : memref<64x32xf32, #tpu.memory_space<vmem>>, vector<64x32xf32>,
    %c0_37 = arith.constant 0 : index
    %c0_38 = arith.constant 0 : index
    %69 = vector.load %arg11[%c0_37, %c0_38] : memref<32x64xf32, #tpu.memory_space<vmem>>, vector<32x64xf32>
    %c0_39 = arith.constant 0 : index
    %c0_40 = arith.constant 0 : index
    %70 = vector.load %arg12[%c0_39, %c0_40] : memref<32x32xf32, #tpu.memory_space<vmem>>, vector<32x32xf32>
    %c0_41 = arith.constant 0 : index
    %c0_42 = arith.constant 0 : index
    %71 = vector.load %arg13[%c0_41, %c0_42] : memref<32x32xf32, #tpu.memory_space<vmem>>, vector<32x32xf32>
    %c0_43 = arith.constant 0 : index
    %c0_44 = arith.constant 0 : index
    %72 = vector.load %arg14[%c0_43, %c0_44] : memref<3x64xf32, #tpu.memory_space<vmem>>, vector<3x64xf32>
    %cst_45 = arith.constant dense<0.000000e+00> : vector<4x64xf32>
    %73 = tpu.matmul %42, %69, %cst_45 {dimension_numbers = #tpu.dot_dimension_numbers<[1], [0], [0], [1], [0, 0, 1, 1], [], []>} : vector<4x32xf32>, vector<32x64xf32>, vector<4x64xf32> -> vector<4x64xf32>
    %74 = vector.extract_strided_slice %72 {offsets = [0, 0], sizes = [1, 64], strides = [1, 1]} : vector<3x64xf32> to vector<1x64xf32>
    %75 = vector.broadcast %74 : vector<1x64xf32> to vector<4x64xf32>
    %76 = arith.addf %73, %75 : vector<4x64xf32>
    %77 = vector.extract_strided_slice %76 {offsets = [0, 0], sizes = [4, 32], strides = [1, 1]} : vector<4x64xf32> to vector<4x32xf32>
    %cst_46 = arith.constant 0.000000e+00 : f32
    %78 = vector.broadcast %cst_46 : f32 to vector<4x32xf32>
    %79 = arith.maximumf %77, %78 : vector<4x32xf32>
    %80 = vector.extract_strided_slice %76 {offsets = [0, 32], sizes = [4, 32], strides = [1, 1]} : vector<4x64xf32> to vector<4x32xf32>
    %cst_47 = arith.constant dense<0.000000e+00> : vector<4x32xf32>
    %81 = tpu.matmul %79, %70, %cst_47 {dimension_numbers = #tpu.dot_dimension_numbers<[1], [0], [0], [1], [0, 0, 1, 1], [], []>} : vector<4x32xf32>, vector<32x32xf32>, vector<4x32xf32> -> vector<4x32xf32>
    %82 = vector.extract_strided_slice %72 {offsets = [1, 0], sizes = [1, 32], strides = [1, 1]} : vector<3x64xf32> to vector<1x32xf32>
    %83 = vector.broadcast %82 : vector<1x32xf32> to vector<4x32xf32>
    %84 = arith.addf %81, %83 : vector<4x32xf32>
    %cst_48 = arith.constant 0.000000e+00 : f32
    %85 = vector.broadcast %cst_48 : f32 to vector<4x32xf32>
    %86 = arith.maximumf %84, %85 : vector<4x32xf32>
    %cst_49 = arith.constant dense<0.000000e+00> : vector<4x32xf32>
    %87 = tpu.matmul %86, %71, %cst_49 {dimension_numbers = #tpu.dot_dimension_numbers<[1], [0], [0], [1], [0, 0, 1, 1], [], []>} : vector<4x32xf32>, vector<32x32xf32>, vector<4x32xf32> -> vector<4x32xf32>
    %88 = vector.extract_strided_slice %72 {offsets = [2, 0], sizes = [1, 32], strides = [1, 1]} : vector<3x64xf32> to vector<1x32xf32>
    %89 = vector.broadcast %88 : vector<1x32xf32> to vector<4x32xf32>
    %90 = arith.addf %87, %89 : vector<4x32xf32>
    %cst_50 = arith.constant 0.000000e+00 : f32
    %91 = vector.broadcast %cst_50 : f32 to vector<4x32xf32>
    %92 = arith.maximumf %90, %91 : vector<4x32xf32>
    %93 = arith.addf %92, %80 : vector<4x32xf32>
    %c0_51 = arith.constant 0 : index
    %c0_52 = arith.constant 0 : index
    %94 = vector.load %arg16[%c0_51, %c0_52] : memref<4x32xf32, #tpu.memory_space<vmem>>, vector<4x32xf32>
    tpu.vector_store %arg16[%c0_51, %c0_52], %93 {strides = array<i32>} : memref<4x32xf32, #tpu.memory_space<vmem>>, vector<4x32xf32>,
    return
  }
}

</mosaic_0001>

<bundles_post_ra>
// kernel: custom-call.11
= control target key start
LH: loop header
LB: loop body
LE: loop exit
PB: predicated region body
PF: predicated region fallthrough
CT: control target
= control target key end

     0   :  { %5 = vsyncpa [#allocation4], 0  ;;  %s979_s0 = inlined_call_operand.vmem [shape: f32[32,32], index: 0, kind: input, shape index: {}]   ;;  %s980_s1 = inlined_call_operand.vmem [shape: f32[32,32], index: 1, kind: output, shape index: {0}]   ;;  %s981_s2 = inlined_call_operand.hbm [shape: s32[32], index: 2, kind: output, shape index: {1}]   ;;  %s982_s3 = inlined_call_operand.vmem [shape: s32[32], index: 3, kind: output, shape index: {2}]  }
   0x1   :  { %s19_s14 = scalar_lea.vmem %s979_s0, 24 }
   0x2   :  { %p518_p0 = scmp.gt.s32.totalorder %s979_s0, %s19_s14 }
   0x3   :  { %s815_s17 = smov (!%p518_p0), [#allocation0]   ;;  %s819_s20 = smov (!%p518_p0), %s979_s0  }
   0x4   :  { %519 = sbr.rel (%p518_p0) target bundleno = 21 (0x15), region = 165 }
   0xb LB: > { %v53_v0 = vld [vmem:[%s821_s20] sm:$0xff]  ;;  %s55_s20 = scalar_lea.vmem %s821_s20, 8   ;;  %s821_s20 = sphi %s819_s20, %s55_s20   ;;  %s817_s17 = sphi %s815_s17, %s56_s17  }
   0xc   : > { %54 = vst [vmem:[%s817_s17] sm:$0xff] %v53_v0  ;;  %s56_s17 = scalar_lea.vmem %s817_s17, 8   ;;  %p50_p1 = scmp.gt.s32.totalorder %s55_s20, %s19_s14 }
   0xe   :  { %52 = sbr.rel (!%p50_p1) target bundleno = 11 (0xb), region = 171 }
  0x15 PF:  { %v68_v1 = vld [vmem:[#allocation0] sm:$0xff]  ;;  %v72_v2 = vld [vmem:[#allocation0 + $0x8] sm:$0xff]  ;;  %v76_v3 = vld [vmem:[#allocation0 + $0x10] sm:$0xff]  ;;  %v83_v4 = vlaneseq  ;;  %v839_v6 = vmov 0   ;;  %s823_s0 = smov 0  }
  0x16   :  { %69 = vst [vmem:[#allocation1] sm:$0xff] %v68_v1  ;;  %73 = vst [vmem:[#allocation1 + $0x8] sm:$0xff] %v72_v2  ;;  %v80_v5 = vld [vmem:[#allocation0 + $0x18] sm:$0xff] }
  0x17   :  { %77 = vst [vmem:[#allocation1 + $0x10] sm:$0xff] %v76_v3  ;;  %82 = vst [vmem:[#allocation2] sm:$0x1] %v839_v6  ;;  %v871_v7 = vshrl.u32 %v83_v4, 7 }
  0x18   :  { %81 = vst [vmem:[#allocation1 + $0x18] sm:$0xff] %v80_v5 }
  0x19 LB: > { %s576_s21 = sshll.u32 %s825_s0, 3  ;;  %s91_s0 = sadd.s32 1, %s825_s0   ;;  %s825_s0 = sphi %s823_s0, %s91_s0  }
  0x1a   : > { %v95_v8 = vstv %s576_s21  ;;  %s93_s22 = scalar_lea.vmem [#allocation7], %s576_s21  ;;  %p88_p2 = scmp.ge.s32.totalorder %s91_s0, 4  }
  0x1b   : > { %v96_v9 = vadd.s32 %v95_v8, %v871_v7  ;;  %s874_s23 = smov (%p88_p2), 0  }
  0x1c   :  { %90 = sbr.rel (!%p88_p2) target bundleno = 25 (0x19), region = 182 }
  0x1d   : > { %97 = vst [vmem:[%s93_s22] sm:$0xff] %v96_v9 }
  0x23 LB: > { %v108_v10 = vld [vmem:[#allocation1] sm:$0xff]  ;;  %v120_v11 = vld [vmem:[#allocation1 + $0x8] sm:$0xff]  ;;  %v880_v12 = vadd.s32 8, %v871_v7  ;;  %v883_v14 = vstv %s829_s23  ;;  %v132_v16 = vld [vmem:[#allocation1 + $0x10] sm:$0xff]  ;;  %v888_v17 = vadd.s32 16, %v871_v7  ;;  %v895_v22 = vadd.s32 24, %v871_v7  ;;  %s829_s23 = sphi %s874_s23, %s103_s23  }
  0x24   : > { %v109_v13 = vand.u32 2147483647, %v108_v10  ;;  %v121_v15 = vand.u32 2147483647, %v120_v11  ;;  %vm112_vm0 = vcmp.ge.s32.totalorder %v871_v7, %v883_v14  ;;  %v133_v20 = vand.u32 2147483647, %v132_v16 }
  0x25   : > { %vm124_vm3 = vcmp.ge.s32.totalorder %v880_v12, %v883_v14  ;;  %v144_v21 = vld [vmem:[#allocation1 + $0x18] sm:$0xff]  ;;  %vm136_vm6 = vcmp.ge.s32.totalorder %v888_v17, %v883_v14  ;;  %vm148_vm9 = vcmp.ge.s32.totalorder %v895_v22, %v883_v14  ;;  %s190_s24 = ssub.s32 128, %s829_s23  ;;  %v196_v58 = vand.u32 127, %v83_v4  ;;  %v199_v60 = vld [vmem:[#allocation2] ss:$0 sm:$0xff]  ;;  %s202_s25 = scalar_lea.vmem [#allocation1], %s829_s23 }
  0x26   : > { %vm578_vm1 = vcmp.gt.f32.partialorder %v109_v13, -inf  ;;  %v145_v25 = vand.u32 2147483647, %v144_v21  ;;  %v204_v61 = vld [vmem:[%s202_s25] ss:$0 sm:$0xff]  ;;  %s208_s27 = scalar_lea.vmem [#allocation7], %s829_s23 }
  0x27   : > { %vm116_vm2 = vmand %vm112_vm0, %vm578_vm1  ;;  %v210_v62 = vld [vmem:[%s208_s27] ss:$0 sm:$0xff]  ;;  %s103_s23 = sadd.s32 1, %s829_s23  }
  0x28   : > { %v117_v18 = vsel %vm116_vm2, %v871_v7, %v883_v14  ;;  %v118_v19 = vsel %vm116_vm2, %v109_v13, -inf  ;;  %p100_p3 = scmp.ge.s32.totalorder %s103_s23, 32  }
  0x29   : > { %vm127_vm4 = vcmp.lt.f32.partialorder %v118_v19, %v121_v15  ;;  %s831_s5 = smov (%p100_p3), %s980_s1   ;;  %s835_s6 = smov (%p100_p3), [#allocation1]  }
  0x2a   : > { %vm128_vm5 = vmand %vm124_vm3, %vm127_vm4  ;;  %vm907_vm3 = vcmp.eq.s32.totalorder %v196_v58, %v883_v14 }
  0x2b   : > { %v129_v23 = vsel %vm128_vm5, %v880_v12, %v117_v18  ;;  %v130_v24 = vsel %vm128_vm5, %v121_v15, %v118_v19  ;;  %vm243_vm5 = vcmp.gt.s32.totalorder %v880_v12, %v883_v14 }
  0x2c   : > { %vm139_vm7 = vcmp.lt.f32.partialorder %v130_v24, %v133_v20 }
  0x2d   : > { %vm140_vm8 = vmand %vm136_vm6, %vm139_vm7  ;;  %vm228_vm6 = vcmp.gt.s32.totalorder %v871_v7, %v883_v14  ;;  %vm258_vm7 = vcmp.gt.s32.totalorder %v888_v17, %v883_v14 }
  0x2e   : > { %v141_v26 = vsel %vm140_vm8, %v888_v17, %v129_v23  ;;  %v142_v27 = vsel %vm140_vm8, %v133_v20, %v130_v24 }
  0x2f   : > { %vm151_vm10 = vcmp.lt.f32.partialorder %v142_v27, %v145_v25 }
  0x30   : > { %vm152_vm11 = vmand %vm148_vm9, %vm151_vm10  ;;  %vm273_vm9 = vcmp.gt.s32.totalorder %v895_v22, %v883_v14 }
  0x31   : > { %v153_v28 = vsel %vm152_vm11, %v895_v22, %v141_v26  ;;  %v154_v29 = vsel %vm152_vm11, %v145_v25, %v142_v27  ;;  %vm247_vm10 = vmand %vm243_vm5, %vm907_vm3 }
  0x32   : > { %v155_v30 = vrot.slane %v154_v29, 1  ;;  %v156_v31 = vrot.slane %v153_v28, 1  ;;  %vm232_vm11 = vmand %vm228_vm6, %vm907_vm3 }
  0x34   : > { %vm157_vm12 = vcmp.ge.f32.partialorder %v155_v30, %v154_v29  ;;  %v160_v32 = vrot.slane %v155_v30, 1  ;;  %v161_v33 = vrot.slane %v156_v31, 1 }
  0x35   : > { %v158_v34 = vsel %vm157_vm12, %v155_v30, %v154_v29  ;;  %v159_v35 = vsel %vm157_vm12, %v156_v31, %v153_v28  ;;  %vm262_vm12 = vmand %vm258_vm7, %vm907_vm3 }
  0x36   : > { %vm162_vm13 = vcmp.ge.f32.partialorder %v160_v32, %v158_v34  ;;  %v165_v36 = vrot.slane %v160_v32, 1  ;;  %v166_v37 = vrot.slane %v161_v33, 1 }
  0x37   : > { %v163_v38 = vsel %vm162_vm13, %v160_v32, %v158_v34  ;;  %v164_v39 = vsel %vm162_vm13, %v161_v33, %v159_v35  ;;  %vm277_vm13 = vmand %vm273_vm9, %vm907_vm3 }
  0x38   : > { %vm167_vm14 = vcmp.ge.f32.partialorder %v165_v36, %v163_v38  ;;  %v170_v40 = vrot.slane %v165_v36, 1  ;;  %v171_v41 = vrot.slane %v166_v37, 1 }
  0x39   : > { %v168_v42 = vsel %vm167_vm14, %v165_v36, %v163_v38  ;;  %v169_v43 = vsel %vm167_vm14, %v166_v37, %v164_v39  ;;  %vm220_vm14 = vcmp.gt.s32.totalorder %v196_v58, %v883_v14 }
  0x3a   : > { %vm172_vm15 = vcmp.ge.f32.partialorder %v170_v40, %v168_v42  ;;  %v175_v44 = vrot.slane %v170_v40, 1  ;;  %v176_v45 = vrot.slane %v171_v41, 1 }
  0x3b   : > { %v173_v46 = vsel %vm172_vm15, %v170_v40, %v168_v42  ;;  %v174_v47 = vsel %vm172_vm15, %v171_v41, %v169_v43 }
  0x3c   : > { %vm177_vm0 = vcmp.ge.f32.partialorder %v175_v44, %v173_v46  ;;  %v180_v48 = vrot.slane %v175_v44, 1  ;;  %v181_v49 = vrot.slane %v176_v45, 1 }
  0x3d   : > { %v178_v50 = vsel %vm177_vm0, %v175_v44, %v173_v46  ;;  %v179_v51 = vsel %vm177_vm0, %v176_v45, %v174_v47 }
  0x3e   : > { %vm182_vm1 = vcmp.ge.f32.partialorder %v180_v48, %v178_v50  ;;  %v185_v52 = vrot.slane %v180_v48, 1  ;;  %v186_v53 = vrot.slane %v181_v49, 1 }
  0x3f   : > { %v183_v54 = vsel %vm182_vm1, %v180_v48, %v178_v50  ;;  %v184_v55 = vsel %vm182_vm1, %v181_v49, %v179_v51 }
  0x40   : > { %vm187_vm2 = vcmp.ge.f32.partialorder %v185_v52, %v183_v54 }
  0x41   : > { %v189_v56 = vsel %vm187_vm2, %v186_v53, %v184_v55 }
  0x42   : > { %191 = vrot.lane.b32.xlu0 %v189_v56, %s190_s24 }
  0xb4   : > { %v192_v57 = vpop.permute.xlu0 %191 }
  0xb5   : > { %586 = vpush %v192_v57 }
  0xe6   : > { %s587_s26 = spop %586 }
  0xe7   : > { %v198_v63 = vstv %s587_s26  ;;  %s203_s28 = scalar_lea.vmem [#allocation1], %s587_s26  ;;  %s209_s29 = scalar_lea.vmem [#allocation7], %s587_s26 }
  0xe8   : > { %v200_v0 = vsel %vm907_vm3, %v198_v63, %v199_v60  ;;  %v205_v1 = vld [vmem:[%s203_s28] ss:$0 sm:$0xff] }
  0xe9   : > { %v211_v2 = vld [vmem:[%s209_s29] ss:$0 sm:$0xff]  ;;  %201 = vst [vmem:[#allocation2] sm:$0x1] %v200_v0  ;;  %206 = vst [vmem:[%s203_s28] sm:$0x1] %v204_v61  ;;  %vm214_vm4 = vcmp.ne.f32.partialorder %v205_v1, 0.0 }
  0xea   : > { %212 = vst [vmem:[%s209_s29] sm:$0x1] %v210_v62  ;;  %207 = vst [vmem:[%s202_s25] sm:$0x1] %v205_v1  ;;  %v221_v29 = vsel %vm220_vm14, %v205_v1, 0.0 }
  0xeb   : > { %213 = vst [vmem:[%s208_s27] sm:$0x1] %v211_v2  ;;  %vm215_vm8 = vmand %vm907_vm3, %vm214_vm4 }
  0xec   : > { %v216_v3 = vsel %vm215_vm8, %v205_v1, 1.0 }
  0xed   : > { %v244_v5 = vsel %vm243_vm5, %v216_v3, 1.0  ;;  %v229_v6 = vsel %vm228_vm6, %v216_v3, 1.0  ;;  %v259_v8 = vsel %vm258_vm7, %v216_v3, 1.0  ;;  %v274_v9 = vsel %vm273_vm9, %v216_v3, 1.0 }
  0xee   : > { %719 = vrcp.f32 %v244_v5 }
  0xef   : > { %721 = vrcp.f32 %v229_v6 }
  0xf0   : > { %723 = vrcp.f32 %v259_v8  ;;  %v339_v42 = vld [vmem:[#allocation2] sm:$0x1] (%p100_p3) }
  0xf1   : > { %725 = vrcp.f32 %v274_v9  ;;  %v240_v11 = vld [vmem:[#allocation1 + $0x8] sm:$0xff]  ;;  %v225_v16 = vld [vmem:[#allocation1] sm:$0xff]  ;;  %v255_v20 = vld [vmem:[#allocation1 + $0x10] sm:$0xff]  ;;  %341 = vst [vmem:[#allocation3] sm:$0x1] (%p100_p3), %v339_v42 }
  0xf2   : > { %v270_v12 = vld [vmem:[#allocation1 + $0x18] sm:$0xff]  ;;  %v288_v41 = vld [vmem:[#allocation7 + $0x10] sm:$0xff] (%p100_p3)  ;;  %v290_v43 = vld [vmem:[#allocation7 + $0x18] sm:$0xff] (%p100_p3) }
  0xf3   :  { %v284_v14 = vld [vmem:[#allocation7] sm:$0xff] (%p100_p3)  ;;  %v286_v40 = vld [vmem:[#allocation7 + $0x8] sm:$0xff] (%p100_p3) }
  0xf8   : > { %v720_v10 = vpop.eup %719 }
  0xf9   : > { %v722_v13 = vpop.eup %721  ;;  %v246_v15 = vmul.f32 %v720_v10, %v240_v11 }
  0xfa   : > { %v724_v18 = vpop.eup %723  ;;  %v231_v19 = vmul.f32 %v722_v13, %v225_v16 }
  0xfb   : > { %v248_v21 = vsel %vm247_vm10, %v246_v15, 0.0  ;;  %v261_v23 = vmul.f32 %v724_v18, %v255_v20  ;;  %v726_v24 = vpop.eup %725 }
  0xfc   : > { %249 = vadd.xlane.f32.xlu1 %v248_v21  ;;  %v233_v25 = vsel %vm232_vm11, %v231_v19, 0.0  ;;  %v276_v27 = vmul.f32 %v726_v24, %v270_v12 }
  0xfd   : > { %234 = vadd.xlane.f32.xlu0 %v233_v25  ;;  %v263_v26 = vsel %vm262_vm12, %v261_v23, 0.0 }
  0xfe   : > { %v278_v28 = vsel %vm277_vm13, %v276_v27, 0.0 }
 0x100   : > { %264 = vadd.xlane.f32.xlu1 %v263_v26 }
 0x104   : > { %279 = vadd.xlane.f32.xlu1 %v278_v28 }
 0x12a   :  { %303 = vxpose.xlu0.b32.start [1/4] (short) (narrow) (%p100_p3), %v284_v14, 8 }
 0x12e   :  { %304 = vxpose.xlu0.b32.cont [2/4] (short) (narrow) (%p100_p3), %v286_v40, 8 }
 0x132   :  { %305 = vxpose.xlu0.b32.cont [3/4] (short) (narrow) (%p100_p3), %v288_v41, 8 }
 0x136   :  { %306 = vxpose.xlu0.b32.end [4/4] (short) (narrow) (%p100_p3), %v290_v43, 8 }
 0x189   : > { %v250_v30 = vpop.xlane.xlu1 %249 }
 0x18a   : > { %v251_v31 = vmul.f32 %v250_v30, %v221_v29  ;;  %v235_v17 = vpop.xlane.xlu0 %234 }
 0x18b   : > { %v236_v32 = vmul.f32 %v235_v17, %v221_v29 }
 0x18c   : > { %v252_v33 = vsub.f32 %v246_v15, %v251_v31 }
 0x18d   : > { %v237_v34 = vsub.f32 %v231_v19, %v236_v32  ;;  %v265_v35 = vpop.xlane.xlu1 %264 }
 0x18e   : > { %253 = vst [vmem:[#allocation1 + $0x8] sm:$0xff] %v252_v33  ;;  %v266_v36 = vmul.f32 %v265_v35, %v221_v29 }
 0x18f   : > { %238 = vst [vmem:[#allocation1] sm:$0xff] %v237_v34 }
 0x190   : > { %v267_v37 = vsub.f32 %v261_v23, %v266_v36 }
 0x191   : > { %v280_v38 = vpop.xlane.xlu1 %279 }
 0x192   : > { %268 = vst [vmem:[#allocation1 + $0x10] sm:$0xff] %v267_v37  ;;  %v281_v22 = vmul.f32 %v280_v38, %v221_v29 }
 0x194   : > { %v282_v39 = vsub.f32 %v276_v27, %v281_v22  ;;  %102 = sbr.rel (!%p100_p3) target bundleno = 35 (0x23), region = 193 }
 0x196   : > { %283 = vst [vmem:[#allocation1 + $0x18] sm:$0xff] %v282_v39 }
 0x1aa   :  { %v319_v44 = vpop.trf.xlu0 }
 0x1ab   :  { %335 = vst [vmem:[#allocation5] sm:$0x1] %v319_v44 }
 0x1b2   :  { %v345_v45 = vld [vmem:[#allocation5] sm:$0x1] }
 0x1b3   :  { %347 = vst [vmem:[#allocation6] sm:$0x1] %v345_v45 }
 0x1b4 LB: > { %v395_v4 = vld [vmem:[%s837_s6] sm:$0xff]  ;;  %s397_s6 = scalar_lea.vmem %s837_s6, 8   ;;  %s837_s6 = sphi %s835_s6, %s397_s6   ;;  %s833_s5 = sphi %s831_s5, %s398_s5  }
 0x1b5   : > { %396 = vst [vmem:[%s833_s5] sm:$0xff] %v395_v4  ;;  %s398_s5 = scalar_lea.vmem %s833_s5, 8   ;;  %p392_p4 = scmp.gt.s32.totalorder %s397_s6, [#allocation1 + $0x18] }
 0x1b6   :  { %s840_s7 = smov (%p392_p4), [#allocation3]  }
 0x1b7   :  { %394 = sbr.rel (!%p392_p4) target bundleno = 436 (0x1b4), region = 215  ;;  %s415_s8 = sshll.u32 (%p392_p4), %s840_s7, 4  ;;  %s416_s8 = int_to_ptr.vmem [resolvable:$true] %s415_s8 }
 0x1b8   :  { %s727_s1 = scalar_lea.vmem (%p392_p4), %s416_s8, 16  ;;  %s731_s11 = scalar_lea.vmem (%p392_p4), %s416_s8, 32 }
 0x1b9   :  { %p728_p5 = scmp.ne.s32.totalorder (%p392_p4), %s416_s8, %s727_s1  ;;  %p732_p6 = scmp.lt.s32.totalorder (%p392_p4), %s416_s8, %s416_s8 }
 0x1ba   :  { %v481_v7 = vld [vmem:[#allocation6] sm:$0x1] (%p392_p4)  ;;  %p733_p7 = scmp.lt.s32.totalorder (%p392_p4), %s731_s11, %s727_s1 }
 0x1bb   :  { %482 = vst [vmem:[%s982_s3] sm:$0x1] (%p392_p4), %v481_v7 }
 0x1bc   :  { %p734_p8 = por (%p392_p4), %p733_p7, %p732_p6 }
 0x1be   :  { %p735_p9 = pnand %p734_p8, %p728_p5 }
 0x1c0   :  { %738 = shalt.err (!%p735_p9)
}
 0x1c1   :  { %s739_s14 = scalar_lea.hbm %s981_s2, 16 }
 0x1c2   :  { %p740_p10 = scmp.ne.s32.totalorder %s981_s2, %s739_s14  ;;  %p743_p11 = scmp.lt.u32.totalorder %s739_s14, %s981_s2 }
 0x1c4   :  { %p745_p12 = pnand %p743_p11, %p740_p10 }
 0x1c6   :  { %748 = shalt.err (!%p745_p12)
}
 0x1c7   :  { %418 = dma.vmem_to_hbm [thread:$0]  %s416_s8, 16, %s981_s2, [#allocation4]  }
 0x1c8   :  { %813 = dma.done.wait [#allocation4], 16  }
 0x1c9   :  { %814 = vsyncadd [#allocation4], 4294967280 }
 0x1ca   :  { %488 = vsyncpa [#allocation4], 1 }

// kernel: custom-call.12
= control target key start
LH: loop header
LB: loop body
LE: loop exit
PB: predicated region body
PF: predicated region fallthrough
CT: control target
= control target key end

     0   :  { %v46_v0 = vlaneseq  ;;  %v729_v10 = vmov -1.0   ;;  %v730_v48 = vmov 0.0   ;;  %s1003_s0 = inlined_call_operand.vmem [shape: f32[1,32,32], index: 0, kind: input, shape index: {}]   ;;  %s1004_s1 = inlined_call_operand.vmem [shape: f32[1,32,32], index: 1, kind: output, shape index: {}]  }
   0x1   :  { %v41_v3 = vld [vmem:[%s1003_s0 + $0x18] sm:$0xff]  ;;  %v39_v37 = vld [vmem:[%s1003_s0 + $0x10] sm:$0xff] }
   0x2   :  { %v741_v1 = vand.u32 127, %v46_v0  ;;  %v743_v2 = vshrl.u32 %v46_v0, 7 }
   0x4   :  { %vm48_vm0 = vcmp.lt.s32.totalorder %v741_v1, 32  ;;  %v99_v4 = vadd.s32 24, %v743_v2  ;;  %vm140_vm4 = vcmp.eq.s32.totalorder %v741_v1, 31  ;;  %vm148_vm6 = vcmp.eq.s32.totalorder %v741_v1, 30 }
   0x5   :  { %v141_v11 = vsel %vm140_vm4, 1.0, %v729_v10  ;;  %vm158_vm7 = vcmp.eq.s32.totalorder %v741_v1, 29  ;;  %vm168_vm8 = vcmp.eq.s32.totalorder %v741_v1, 28  ;;  %vm178_vm9 = vcmp.eq.s32.totalorder %v741_v1, 27 }
   0x6   :  { %vm100_vm1 = vcmp.eq.s32.totalorder %v99_v4, %v741_v1  ;;  %vm105_vm2 = vcmp.le.s32.totalorder %v99_v4, %v741_v1  ;;  %vm137_vm5 = vcmp.eq.s32.totalorder %v741_v1, %v99_v4  ;;  %v83_v32 = vadd.s32 16, %v743_v2 }
   0x7   :  { %v102_v5 = vsel %vm100_vm1, %v41_v3, 0.0  ;;  %vm106_vm3 = vmand %vm105_vm2, %vm48_vm0  ;;  %v142_v12 = vsel %vm137_vm5, %v141_v11, 0.0  ;;  %vm188_vm11 = vcmp.eq.s32.totalorder %v741_v1, 26  ;;  %vm198_vm15 = vcmp.eq.s32.totalorder %v741_v1, 25 }
   0x8   :  { %v107_v6 = vsel %vm106_vm3, %v41_v3, 0.0  ;;  %103 = vadd.xlane.f32.xlu0 %v102_v5  ;;  %vm84_vm10 = vcmp.eq.s32.totalorder %v83_v32, %v741_v1  ;;  %vm89_vm12 = vcmp.le.s32.totalorder %v83_v32, %v741_v1  ;;  %vm130_vm14 = vcmp.eq.s32.totalorder %v741_v1, %v83_v32 }
   0x9   :  { %v86_v38 = vsel %vm84_vm10, %v39_v37, 0.0  ;;  %vm90_vm13 = vmand %vm89_vm12, %vm48_vm0  ;;  %v131_v49 = vsel %vm130_vm14, -1.0, %v730_v48  ;;  %vm218_vm1 = vcmp.eq.s32.totalorder %v741_v1, 23  ;;  %vm208_vm2 = vcmp.eq.s32.totalorder %v741_v1, 24 }
   0xa   :  { %v91_v45 = vsel %vm90_vm13, %v39_v37, 0.0  ;;  %vm232_vm3 = vcmp.eq.s32.totalorder %v741_v1, 22  ;;  %vm246_vm4 = vcmp.eq.s32.totalorder %v741_v1, 21  ;;  %vm260_vm5 = vcmp.eq.s32.totalorder %v741_v1, 20 }
   0xb   :  { %vm316_vm13 = vcmp.eq.s32.totalorder %v741_v1, 16  ;;  %vm330_vm14 = vcmp.eq.s32.totalorder %v741_v1, 15 }
  0x95   :  { %v754_v7 = vpop.xlane.xlu0 %103 }
  0x96   :  { %721 = vrcp.f32 %v754_v7 }
  0xa0   :  { %v757_v8 = vpop.eup %721 }
  0xa1   :  { %v109_v9 = vmul.f32 %v757_v8, %v107_v6 }
  0xa3   :  { %110 = vst [vmem:[#allocation2 + $0x18] sm:$0xff] %v109_v9 }
  0xaa   :  { %v144_v13 = vld [vmem:[#allocation2 + $0x1e] ss:$0 sm:$0xff]  ;;  %v154_v16 = vld [vmem:[#allocation2 + $0x1d] ss:$0 sm:$0xff]  ;;  %v164_v21 = vld [vmem:[#allocation2 + $0x1c] ss:$0 sm:$0xff] }
  0xab   :  { %v145_v14 = vxor.u32 2147483648, %v144_v13  ;;  %v155_v18 = vxor.u32 2147483648, %v154_v16  ;;  %v165_v23 = vxor.u32 2147483648, %v164_v21  ;;  %v174_v26 = vld [vmem:[#allocation2 + $0x1b] ss:$0 sm:$0xff] }
  0xac   :  { %v175_v28 = vxor.u32 2147483648, %v174_v26  ;;  %v184_v31 = vld [vmem:[#allocation2 + $0x1a] ss:$0 sm:$0xff]  ;;  %v194_v39 = vld [vmem:[#allocation2 + $0x19] ss:$0 sm:$0xff] }
  0xad   :  { %v149_v15 = vmul.f32 %v145_v14, %v142_v12  ;;  %v185_v34 = vxor.u32 2147483648, %v184_v31  ;;  %v195_v41 = vxor.u32 2147483648, %v194_v39  ;;  %v204_v53 = vld [vmem:[#allocation2 + $0x18] ss:$0 sm:$0xff]  ;;  %v67_v39 = vadd.s32 8, %v743_v2 }
  0xae   :  { %v205_v55 = vxor.u32 2147483648, %v204_v53 }
  0xaf   :  { %150 = vadd.xlane.f32.xlu0 %v149_v15  ;;  %vm123_vm12 = vcmp.eq.s32.totalorder %v741_v1, %v67_v39 }
 0x13c   :  { %v151_v17 = vpop.xlane.xlu0 %150 }
 0x13d   :  { %v152_v19 = vsel %vm148_vm6, %v151_v17, %v142_v12  ;;  %vm274_vm6 = vcmp.eq.s32.totalorder %v741_v1, 19 }
 0x13e   :  { %v159_v20 = vmul.f32 %v155_v18, %v152_v19 }
 0x140   :  { %160 = vadd.xlane.f32.xlu1 %v159_v20 }
 0x1cd   :  { %v161_v22 = vpop.xlane.xlu1 %160 }
 0x1ce   :  { %v162_v24 = vsel %vm158_vm7, %v161_v22, %v152_v19  ;;  %vm288_vm7 = vcmp.eq.s32.totalorder %v741_v1, 18 }
 0x1cf   :  { %v169_v25 = vmul.f32 %v165_v23, %v162_v24 }
 0x1d1   :  { %170 = vadd.xlane.f32.xlu1 %v169_v25 }
 0x25e   :  { %v171_v27 = vpop.xlane.xlu1 %170 }
 0x25f   :  { %v172_v29 = vsel %vm168_vm8, %v171_v27, %v162_v24  ;;  %vm68_vm8 = vcmp.eq.s32.totalorder %v67_v39, %v741_v1 }
 0x260   :  { %v179_v30 = vmul.f32 %v175_v28, %v172_v29 }
 0x262   :  { %180 = vadd.xlane.f32.xlu0 %v179_v30 }
 0x2ef   :  { %v181_v33 = vpop.xlane.xlu0 %180 }
 0x2f0   :  { %v182_v35 = vsel %vm178_vm9, %v181_v33, %v172_v29  ;;  %vm73_vm9 = vcmp.le.s32.totalorder %v67_v39, %v741_v1 }
 0x2f1   :  { %v189_v36 = vmul.f32 %v185_v34, %v182_v35  ;;  %vm74_vm10 = vmand %vm73_vm9, %vm48_vm0  ;;  %vm116_vm9 = vcmp.eq.s32.totalorder %v741_v1, %v743_v2 }
 0x2f3   :  { %190 = vadd.xlane.f32.xlu1 %v189_v36 }
 0x2f7   :  { %87 = vadd.xlane.f32.xlu1 %v86_v38 }
 0x380   :  { %v191_v40 = vpop.xlane.xlu1 %190 }
 0x381   :  { %v192_v42 = vsel %vm188_vm11, %v191_v40, %v182_v35  ;;  %vm302_vm11 = vcmp.eq.s32.totalorder %v741_v1, 17 }
 0x382   :  { %v199_v43 = vmul.f32 %v195_v41, %v192_v42 }
 0x384   :  { %200 = vadd.xlane.f32.xlu0 %v199_v43  ;;  %v772_v44 = vpop.xlane.xlu1 %87 }
 0x385   :  { %723 = vrcp.f32 %v772_v44 }
 0x38f   :  { %v778_v46 = vpop.eup %723 }
 0x390   :  { %v93_v47 = vmul.f32 %v778_v46, %v91_v45  ;;  %v37_v45 = vld [vmem:[%s1003_s0 + $0x8] sm:$0xff] }
 0x392   :  { %94 = vst [vmem:[#allocation2 + $0x10] sm:$0xff] %v93_v47  ;;  %v70_v47 = vsel %vm68_vm8, %v37_v45, 0.0 }
 0x399   :  { %v214_v50 = vld [vmem:[#allocation2 + $0x17] ss:$0 sm:$0xff]  ;;  %v228_v58 = vld [vmem:[#allocation2 + $0x16] ss:$0 sm:$0xff]  ;;  %v242_v4 = vld [vmem:[#allocation2 + $0x15] ss:$0 sm:$0xff] }
 0x39a   :  { %v215_v51 = vxor.u32 2147483648, %v214_v50  ;;  %v229_v59 = vxor.u32 2147483648, %v228_v58  ;;  %v243_v6 = vxor.u32 2147483648, %v242_v4  ;;  %v256_v14 = vld [vmem:[#allocation2 + $0x14] ss:$0 sm:$0xff] }
 0x39b   :  { %v257_v16 = vxor.u32 2147483648, %v256_v14  ;;  %v270_v22 = vld [vmem:[#allocation2 + $0x13] ss:$0 sm:$0xff]  ;;  %v284_v30 = vld [vmem:[#allocation2 + $0x12] ss:$0 sm:$0xff] }
 0x39c   :  { %v219_v52 = vmul.f32 %v215_v51, %v131_v49  ;;  %v271_v24 = vxor.u32 2147483648, %v270_v22  ;;  %v285_v32 = vxor.u32 2147483648, %v284_v30  ;;  %v298_v38 = vld [vmem:[#allocation2 + $0x11] ss:$0 sm:$0xff] }
 0x39d   :  { %v299_v41 = vxor.u32 2147483648, %v298_v38 }
 0x39e   :  { %220 = vadd.xlane.f32.xlu1 %v219_v52 }
 0x411   :  { %v201_v54 = vpop.xlane.xlu0 %200 }
 0x412   :  { %v202_v56 = vsel %vm198_vm15, %v201_v54, %v192_v42  ;;  %v75_v54 = vsel %vm74_vm10, %v37_v45, 0.0  ;;  %vm348_vm15 = vcmp.eq.s32.totalorder %v741_v1, 14  ;;  %vm474_vm10 = vcmp.eq.s32.totalorder %v741_v1, 7 }
 0x413   :  { %v209_v57 = vmul.f32 %v205_v55, %v202_v56 }
 0x415   :  { %210 = vadd.xlane.f32.xlu0 %v209_v57 }
 0x42b   :  { %v221_v60 = vpop.xlane.xlu1 %220 }
 0x42c   :  { %v222_v61 = vsel %vm218_vm1, %v221_v60, %v131_v49 }
 0x42d   :  { %v233_v62 = vmul.f32 %v229_v59, %v222_v61 }
 0x42f   :  { %234 = vadd.xlane.f32.xlu1 %v233_v62 }
 0x4a2   :  { %v211_v63 = vpop.xlane.xlu0 %210 }
 0x4a3   :  { %v212_v0 = vsel %vm208_vm2, %v211_v63, %v202_v56  ;;  %vm384_vm2 = vcmp.eq.s32.totalorder %v741_v1, 12 }
 0x4a4   :  { %v223_v3 = vmul.f32 %v215_v51, %v212_v0 }
 0x4a6   :  { %224 = vadd.xlane.f32.xlu0 %v223_v3  ;;  %v124_v3 = vsel %vm123_vm12, -1.0, %v730_v48  ;;  %vm518_vm12 = vcmp.eq.s32.totalorder %v741_v1, 5 }
 0x4bc   :  { %v235_v5 = vpop.xlane.xlu1 %234 }
 0x4bd   :  { %v236_v9 = vsel %vm232_vm3, %v235_v5, %v222_v61 }
 0x4be   :  { %v247_v10 = vmul.f32 %v243_v6, %v236_v9 }
 0x4c0   :  { %248 = vadd.xlane.f32.xlu1 %v247_v10 }
 0x533   :  { %v225_v11 = vpop.xlane.xlu0 %224 }
 0x534   :  { %v226_v12 = vsel %vm218_vm1, %v225_v11, %v212_v0  ;;  %vm366_vm1 = vcmp.eq.s32.totalorder %v741_v1, 13 }
 0x535   :  { %v237_v13 = vmul.f32 %v229_v59, %v226_v12  ;;  %v312_v59 = vld [vmem:[#allocation2 + $0x10] ss:$0 sm:$0xff] }
 0x536   :  { %v313_v63 = vxor.u32 2147483648, %v312_v59 }
 0x537   :  { %238 = vadd.xlane.f32.xlu0 %v237_v13 }
 0x54d   :  { %v249_v15 = vpop.xlane.xlu1 %248 }
 0x54e   :  { %v250_v17 = vsel %vm246_vm4, %v249_v15, %v236_v9 }
 0x54f   :  { %v261_v18 = vmul.f32 %v257_v16, %v250_v17 }
 0x551   :  { %262 = vadd.xlane.f32.xlu1 %v261_v18 }
 0x5c4   :  { %v239_v19 = vpop.xlane.xlu0 %238 }
 0x5c5   :  { %v240_v20 = vsel %vm232_vm3, %v239_v19, %v226_v12  ;;  %vm402_vm3 = vcmp.eq.s32.totalorder %v741_v1, 11 }
 0x5c6   :  { %v251_v21 = vmul.f32 %v243_v6, %v240_v20 }
 0x5c8   :  { %252 = vadd.xlane.f32.xlu0 %v251_v21 }
 0x5de   :  { %v263_v23 = vpop.xlane.xlu1 %262 }
 0x5df   :  { %v264_v25 = vsel %vm260_vm5, %v263_v23, %v250_v17 }
 0x5e0   :  { %v275_v26 = vmul.f32 %v271_v24, %v264_v25 }
 0x5e2   :  { %276 = vadd.xlane.f32.xlu1 %v275_v26 }
 0x655   :  { %v253_v27 = vpop.xlane.xlu0 %252 }
 0x656   :  { %v254_v28 = vsel %vm246_vm4, %v253_v27, %v240_v20  ;;  %vm420_vm4 = vcmp.eq.s32.totalorder %v741_v1, 10 }
 0x657   :  { %v265_v29 = vmul.f32 %v257_v16, %v254_v28 }
 0x659   :  { %266 = vadd.xlane.f32.xlu0 %v265_v29 }
 0x66f   :  { %v277_v31 = vpop.xlane.xlu1 %276 }
 0x670   :  { %v278_v33 = vsel %vm274_vm6, %v277_v31, %v264_v25 }
 0x671   :  { %v289_v34 = vmul.f32 %v285_v32, %v278_v33 }
 0x673   :  { %290 = vadd.xlane.f32.xlu1 %v289_v34 }
 0x6e6   :  { %v267_v35 = vpop.xlane.xlu0 %266 }
 0x6e7   :  { %v268_v36 = vsel %vm260_vm5, %v267_v35, %v254_v28  ;;  %vm52_vm5 = vcmp.eq.s32.totalorder %v743_v2, %v741_v1 }
 0x6e8   :  { %v279_v37 = vmul.f32 %v271_v24, %v268_v36 }
 0x6ea   :  { %280 = vadd.xlane.f32.xlu0 %v279_v37 }
 0x700   :  { %v291_v40 = vpop.xlane.xlu1 %290 }
 0x701   :  { %v292_v42 = vsel %vm288_vm7, %v291_v40, %v278_v33 }
 0x702   :  { %v303_v43 = vmul.f32 %v299_v41, %v292_v42 }
 0x704   :  { %304 = vadd.xlane.f32.xlu1 %v303_v43 }
 0x708   :  { %71 = vadd.xlane.f32.xlu1 %v70_v47 }
 0x777   :  { %v281_v49 = vpop.xlane.xlu0 %280 }
 0x778   :  { %v282_v50 = vsel %vm274_vm6, %v281_v49, %v268_v36  ;;  %vm438_vm6 = vcmp.eq.s32.totalorder %v741_v1, 9 }
 0x779   :  { %v293_v51 = vmul.f32 %v285_v32, %v282_v50 }
 0x77b   :  { %294 = vadd.xlane.f32.xlu0 %v293_v51 }
 0x791   :  { %v305_v52 = vpop.xlane.xlu1 %304 }
 0x792   :  { %v306_v62 = vsel %vm302_vm11, %v305_v52, %v292_v42 }
 0x793   :  { %v317_v4 = vmul.f32 %v313_v63, %v306_v62 }
 0x795   :  { %v818_v53 = vpop.xlane.xlu1 %71 }
 0x796   :  { %725 = vrcp.f32 %v818_v53 }
 0x7a0   :  { %v824_v55 = vpop.eup %725 }
 0x7a1   :  { %v77_v56 = vmul.f32 %v824_v55, %v75_v54 }
 0x7a3   :  { %78 = vst [vmem:[#allocation2 + $0x8] sm:$0xff] %v77_v56 }
 0x7aa   :  { %v326_v60 = vld [vmem:[#allocation2 + $0xf] ss:$0 sm:$0xff]  ;;  %v344_v11 = vld [vmem:[#allocation2 + $0xe] ss:$0 sm:$0xff]  ;;  %v362_v24 = vld [vmem:[#allocation2 + $0xd] ss:$0 sm:$0xff] }
 0x7ab   :  { %v327_v0 = vxor.u32 2147483648, %v326_v60  ;;  %v345_v15 = vxor.u32 2147483648, %v344_v11  ;;  %v363_v27 = vxor.u32 2147483648, %v362_v24  ;;  %v380_v35 = vld [vmem:[#allocation2 + $0xc] ss:$0 sm:$0xff] }
 0x7ac   :  { %v381_v38 = vxor.u32 2147483648, %v380_v35  ;;  %v398_v49 = vld [vmem:[#allocation2 + $0xb] ss:$0 sm:$0xff] }
 0x7ad   :  { %v331_v5 = vmul.f32 %v327_v0, %v124_v3  ;;  %v399_v52 = vxor.u32 2147483648, %v398_v49 }
 0x808   :  { %v295_v57 = vpop.xlane.xlu0 %294 }
 0x809   :  { %v296_v58 = vsel %vm288_vm7, %v295_v57, %v282_v50  ;;  %vm57_vm7 = vcmp.le.s32.totalorder %v743_v2, %v741_v1 }
 0x80a   :  { %v307_v61 = vmul.f32 %v299_v41, %v296_v58  ;;  %vm58_vm8 = vmand %vm57_vm7, %vm48_vm0  ;;  %vm456_vm0 = vcmp.eq.s32.totalorder %v741_v1, 8 }
 0x80c   :  { %308 = vadd.xlane.f32.xlu0 %v307_v61 }
 0x810   :  { %318 = vadd.xlane.f32.xlu0 %v317_v4 }
 0x814   :  { %332 = vadd.xlane.f32.xlu0 %v331_v5 }
 0x899   :  { %v309_v6 = vpop.xlane.xlu0 %308 }
 0x89a   :  { %v310_v9 = vsel %vm302_vm11, %v309_v6, %v296_v58  ;;  %vm496_vm11 = vcmp.eq.s32.totalorder %v741_v1, 6 }
 0x89b   :  { %v321_v10 = vmul.f32 %v313_v63, %v310_v9 }
 0x89d   :  { %v319_v12 = vpop.xlane.xlu0 %318  ;;  %322 = vadd.xlane.f32.xlu1 %v321_v10 }
 0x89e   :  { %v320_v13 = vsel %vm316_vm13, %v319_v12, %v306_v62  ;;  %v416_v62 = vld [vmem:[#allocation2 + $0xa] ss:$0 sm:$0xff] }
 0x89f   :  { %v335_v14 = vmul.f32 %v327_v0, %v320_v13 }
 0x8a1   :  { %336 = vadd.xlane.f32.xlu1 %v335_v14  ;;  %v333_v16 = vpop.xlane.xlu0 %332 }
 0x8a2   :  { %v334_v17 = vsel %vm330_vm14, %v333_v16, %v124_v3  ;;  %v417_v3 = vxor.u32 2147483648, %v416_v62 }
 0x8a3   :  { %v349_v18 = vmul.f32 %v345_v15, %v334_v17 }
 0x8a5   :  { %350 = vadd.xlane.f32.xlu1 %v349_v18 }
 0x92a   :  { %v323_v19 = vpop.xlane.xlu1 %322 }
 0x92b   :  { %v324_v20 = vsel %vm316_vm13, %v323_v19, %v310_v9  ;;  %vm540_vm13 = vcmp.eq.s32.totalorder %v741_v1, 4 }
 0x92c   :  { %v339_v21 = vmul.f32 %v327_v0, %v324_v20 }
 0x92e   :  { %340 = vadd.xlane.f32.xlu0 %v339_v21  ;;  %v337_v22 = vpop.xlane.xlu1 %336 }
 0x92f   :  { %v338_v23 = vsel %vm330_vm14, %v337_v22, %v320_v13  ;;  %v434_v13 = vld [vmem:[#allocation2 + $0x9] ss:$0 sm:$0xff] }
 0x930   :  { %v353_v25 = vmul.f32 %v345_v15, %v338_v23  ;;  %v435_v16 = vxor.u32 2147483648, %v434_v13 }
 0x932   :  { %354 = vadd.xlane.f32.xlu0 %v353_v25  ;;  %v351_v26 = vpop.xlane.xlu1 %350  ;;  %v35_v25 = vld [vmem:[%s1003_s0] sm:$0xff] }
 0x933   :  { %v352_v28 = vsel %vm348_vm15, %v351_v26, %v334_v17  ;;  %v54_v26 = vsel %vm52_vm5, %v35_v25, 0.0  ;;  %vm651_vm5 = vweird.f32 %v818_v53 }
 0x934   :  { %v367_v29 = vmul.f32 %v363_v27, %v352_v28 }
 0x936   :  { %368 = vadd.xlane.f32.xlu0 %v367_v29 }
 0x9bb   :  { %v341_v30 = vpop.xlane.xlu0 %340 }
 0x9bc   :  { %v342_v31 = vsel %vm330_vm14, %v341_v30, %v324_v20  ;;  %v452_v30 = vld [vmem:[#allocation2 + $0x8] ss:$0 sm:$0xff]  ;;  %vm562_vm14 = vcmp.eq.s32.totalorder %v741_v1, 3 }
 0x9bd   :  { %v357_v32 = vmul.f32 %v345_v15, %v342_v31 }
 0x9bf   :  { %358 = vadd.xlane.f32.xlu1 %v357_v32  ;;  %v355_v33 = vpop.xlane.xlu0 %354 }
 0x9c0   :  { %v356_v34 = vsel %vm348_vm15, %v355_v33, %v338_v23 }
 0x9c1   :  { %v371_v36 = vmul.f32 %v363_v27, %v356_v34 }
 0x9c3   :  { %372 = vadd.xlane.f32.xlu1 %v371_v36  ;;  %v369_v37 = vpop.xlane.xlu0 %368 }
 0x9c4   :  { %v370_v39 = vsel %vm366_vm1, %v369_v37, %v352_v28 }
 0x9c5   :  { %v385_v40 = vmul.f32 %v381_v38, %v370_v39 }
 0x9c7   :  { %386 = vadd.xlane.f32.xlu1 %v385_v40 }
 0xa4c   :  { %v359_v41 = vpop.xlane.xlu1 %358 }
 0xa4d   :  { %v360_v42 = vsel %vm348_vm15, %v359_v41, %v342_v31  ;;  %vm584_vm15 = vcmp.eq.s32.totalorder %v741_v1, 2 }
 0xa4e   :  { %v375_v43 = vmul.f32 %v363_v27, %v360_v42 }
 0xa50   :  { %376 = vadd.xlane.f32.xlu0 %v375_v43  ;;  %v373_v45 = vpop.xlane.xlu1 %372 }
 0xa51   :  { %v374_v47 = vsel %vm366_vm1, %v373_v45, %v356_v34  ;;  %v453_v34 = vxor.u32 2147483648, %v452_v30 }
 0xa52   :  { %v389_v50 = vmul.f32 %v381_v38, %v374_v47 }
 0xa54   :  { %390 = vadd.xlane.f32.xlu0 %v389_v50  ;;  %v387_v51 = vpop.xlane.xlu1 %386 }
 0xa55   :  { %v388_v54 = vsel %vm384_vm2, %v387_v51, %v370_v39  ;;  %v59_v39 = vsel %vm58_vm8, %v35_v25, 0.0 }
 0xa56   :  { %v403_v56 = vmul.f32 %v399_v52, %v388_v54 }
 0xa58   :  { %404 = vadd.xlane.f32.xlu0 %v403_v56 }
 0xadd   :  { %v377_v57 = vpop.xlane.xlu0 %376 }
 0xade   :  { %v378_v58 = vsel %vm366_vm1, %v377_v57, %v360_v42  ;;  %v117_v42 = vsel %vm116_vm9, -1.0, %v730_v48  ;;  %vm606_vm1 = vcmp.eq.s32.totalorder %v741_v1, 1 }
 0xadf   :  { %v393_v59 = vmul.f32 %v381_v38, %v378_v58 }
 0xae1   :  { %394 = vadd.xlane.f32.xlu1 %v393_v59  ;;  %v391_v60 = vpop.xlane.xlu0 %390 }
 0xae2   :  { %v392_v61 = vsel %vm384_vm2, %v391_v60, %v374_v47 }
 0xae3   :  { %v407_v63 = vmul.f32 %v399_v52, %v392_v61 }
 0xae5   :  { %408 = vadd.xlane.f32.xlu1 %v407_v63  ;;  %v405_v0 = vpop.xlane.xlu0 %404 }
 0xae6   :  { %v406_v4 = vsel %vm402_vm3, %v405_v0, %v388_v54 }
 0xae7   :  { %v421_v5 = vmul.f32 %v417_v3, %v406_v4 }
 0xae9   :  { %422 = vadd.xlane.f32.xlu1 %v421_v5 }
 0xb6e   :  { %v395_v6 = vpop.xlane.xlu1 %394 }
 0xb6f   :  { %v396_v9 = vsel %vm384_vm2, %v395_v6, %v378_v58  ;;  %vm627_vm2 = vcmp.eq.s32.totalorder %v741_v1, 0 }
 0xb70   :  { %v411_v10 = vmul.f32 %v399_v52, %v396_v9 }
 0xb72   :  { %412 = vadd.xlane.f32.xlu0 %v411_v10  ;;  %v409_v11 = vpop.xlane.xlu1 %408 }
 0xb73   :  { %v410_v12 = vsel %vm402_vm3, %v409_v11, %v392_v61 }
 0xb74   :  { %v425_v14 = vmul.f32 %v417_v3, %v410_v12 }
 0xb76   :  { %426 = vadd.xlane.f32.xlu0 %v425_v14  ;;  %v423_v15 = vpop.xlane.xlu1 %422 }
 0xb77   :  { %v424_v17 = vsel %vm420_vm4, %v423_v15, %v406_v4 }
 0xb78   :  { %v439_v18 = vmul.f32 %v435_v16, %v424_v17 }
 0xb7a   :  { %440 = vadd.xlane.f32.xlu0 %v439_v18 }
 0xbff   :  { %v413_v19 = vpop.xlane.xlu0 %412 }
 0xc00   :  { %v414_v20 = vsel %vm402_vm3, %v413_v19, %v396_v9 }
 0xc01   :  { %v429_v21 = vmul.f32 %v417_v3, %v414_v20 }
 0xc03   :  { %430 = vadd.xlane.f32.xlu1 %v429_v21  ;;  %v427_v22 = vpop.xlane.xlu0 %426 }
 0xc04   :  { %v428_v23 = vsel %vm420_vm4, %v427_v22, %v410_v12 }
 0xc05   :  { %v443_v24 = vmul.f32 %v435_v16, %v428_v23 }
 0xc07   :  { %444 = vadd.xlane.f32.xlu1 %v443_v24  ;;  %v441_v27 = vpop.xlane.xlu0 %440 }
 0xc08   :  { %v442_v32 = vsel %vm438_vm6, %v441_v27, %v424_v17 }
 0xc09   :  { %v457_v36 = vmul.f32 %v453_v34, %v442_v32 }
 0xc0b   :  { %55 = vadd.xlane.f32.xlu1 %v54_v26 }
 0xc90   :  { %v431_v28 = vpop.xlane.xlu1 %430 }
 0xc91   :  { %v432_v29 = vsel %vm420_vm4, %v431_v28, %v414_v20  ;;  %vm657_vm4 = vweird.f32 %v772_v44 }
 0xc92   :  { %v447_v31 = vmul.f32 %v435_v16, %v432_v29 }
 0xc94   :  { %448 = vadd.xlane.f32.xlu0 %v447_v31  ;;  %v445_v33 = vpop.xlane.xlu1 %444 }
 0xc95   :  { %v446_v35 = vsel %vm438_vm6, %v445_v33, %v428_v23 }
 0xc96   :  { %v461_v37 = vmul.f32 %v453_v34, %v446_v35 }
 0xc98   :  { %458 = vadd.xlane.f32.xlu0 %v457_v36  ;;  %462 = vadd.xlane.f32.xlu1 %v461_v37  ;;  %v889_v38 = vpop.xlane.xlu1 %55 }
 0xc99   :  { %727 = vrcp.f32 %v889_v38  ;;  %vm646_vm3 = vweird.f32 %v889_v38 }
 0xca3   :  { %v896_v40 = vpop.eup %727 }
 0xca4   :  { %v61_v41 = vmul.f32 %v896_v40, %v59_v39 }
 0xca6   :  { %62 = vst [vmem:[#allocation2] sm:$0xff] %v61_v41 }
 0xcad   :  { %v470_v43 = vld [vmem:[#allocation2 + $0x7] ss:$0 sm:$0xff]  ;;  %v492_v58 = vld [vmem:[#allocation2 + $0x6] ss:$0 sm:$0xff]  ;;  %v514_v12 = vld [vmem:[#allocation2 + $0x5] ss:$0 sm:$0xff] }
 0xcae   :  { %v471_v45 = vxor.u32 2147483648, %v470_v43  ;;  %v493_v59 = vxor.u32 2147483648, %v492_v58  ;;  %v515_v14 = vxor.u32 2147483648, %v514_v12  ;;  %v536_v26 = vld [vmem:[#allocation2 + $0x4] ss:$0 sm:$0xff] }
 0xcaf   :  { %v537_v28 = vxor.u32 2147483648, %v536_v26 }
 0xcb0   :  { %v475_v47 = vmul.f32 %v471_v45, %v117_v42 }
 0xcb2   :  { %476 = vadd.xlane.f32.xlu1 %v475_v47 }
 0xd21   :  { %v449_v49 = vpop.xlane.xlu0 %448 }
 0xd22   :  { %v450_v50 = vsel %vm438_vm6, %v449_v49, %v432_v29  ;;  %vm663_vm6 = vweird.f32 %v754_v7 }
 0xd23   :  { %v465_v51 = vmul.f32 %v453_v34, %v450_v50 }
 0xd25   :  { %466 = vadd.xlane.f32.xlu0 %v465_v51  ;;  %v459_v52 = vpop.xlane.xlu0 %458  ;;  %v463_v54 = vpop.xlane.xlu1 %462 }
 0xd26   :  { %v460_v56 = vsel %vm456_vm0, %v459_v52, %v442_v32  ;;  %v464_v2 = vsel %vm456_vm0, %v463_v54, %v446_v35 }
 0xd27   :  { %v479_v48 = vmul.f32 %v471_v45, %v460_v56  ;;  %v483_v57 = vmul.f32 %v471_v45, %v464_v2 }
 0xd29   :  { %480 = vadd.xlane.f32.xlu0 %v479_v48  ;;  %484 = vadd.xlane.f32.xlu1 %v483_v57 }
 0xd3f   :  { %v477_v60 = vpop.xlane.xlu1 %476 }
 0xd40   :  { %v478_v61 = vsel %vm474_vm10, %v477_v60, %v117_v42  ;;  %v558_v42 = vld [vmem:[#allocation2 + $0x3] ss:$0 sm:$0xff] }
 0xd41   :  { %v497_v62 = vmul.f32 %v493_v59, %v478_v61 }
 0xd43   :  { %498 = vadd.xlane.f32.xlu1 %v497_v62 }
 0xdb2   :  { %v467_v63 = vpop.xlane.xlu0 %466 }
 0xdb3   :  { %v468_v0 = vsel %vm456_vm0, %v467_v63, %v450_v50 }
 0xdb4   :  { %v487_v3 = vmul.f32 %v471_v45, %v468_v0  ;;  %v559_v45 = vxor.u32 2147483648, %v558_v42 }
 0xdb6   :  { %488 = vadd.xlane.f32.xlu0 %v487_v3  ;;  %v481_v4 = vpop.xlane.xlu0 %480  ;;  %v485_v5 = vpop.xlane.xlu1 %484 }
 0xdb7   :  { %v482_v6 = vsel %vm474_vm10, %v481_v4, %v460_v56  ;;  %v486_v9 = vsel %vm474_vm10, %v485_v5, %v464_v2 }
 0xdb8   :  { %v501_v10 = vmul.f32 %v493_v59, %v482_v6  ;;  %v505_v11 = vmul.f32 %v493_v59, %v486_v9 }
 0xdba   :  { %502 = vadd.xlane.f32.xlu0 %v501_v10  ;;  %506 = vadd.xlane.f32.xlu1 %v505_v11 }
 0xdd0   :  { %v499_v13 = vpop.xlane.xlu1 %498 }
 0xdd1   :  { %v500_v15 = vsel %vm496_vm11, %v499_v13, %v478_v61  ;;  %v602_v13 = vld [vmem:[#allocation2 + $0x1] ss:$0 sm:$0xff] }
 0xdd2   :  { %v519_v16 = vmul.f32 %v515_v14, %v500_v15 }
 0xdd4   :  { %520 = vadd.xlane.f32.xlu1 %v519_v16 }
 0xe43   :  { %v489_v17 = vpop.xlane.xlu0 %488 }
 0xe44   :  { %v490_v18 = vsel %vm474_vm10, %v489_v17, %v468_v0 }
 0xe45   :  { %v509_v19 = vmul.f32 %v493_v59, %v490_v18  ;;  %v580_v59 = vld [vmem:[#allocation2 + $0x2] ss:$0 sm:$0xff] }
 0xe46   :  { %v581_v61 = vxor.u32 2147483648, %v580_v59 }
 0xe47   :  { %510 = vadd.xlane.f32.xlu0 %v509_v19  ;;  %v503_v20 = vpop.xlane.xlu0 %502  ;;  %v507_v21 = vpop.xlane.xlu1 %506 }
 0xe48   :  { %v504_v22 = vsel %vm496_vm11, %v503_v20, %v482_v6  ;;  %v508_v23 = vsel %vm496_vm11, %v507_v21, %v486_v9 }
 0xe49   :  { %v523_v24 = vmul.f32 %v515_v14, %v504_v22  ;;  %v527_v25 = vmul.f32 %v515_v14, %v508_v23 }
 0xe4b   :  { %524 = vadd.xlane.f32.xlu0 %v523_v24  ;;  %528 = vadd.xlane.f32.xlu1 %v527_v25 }
 0xe61   :  { %v521_v27 = vpop.xlane.xlu1 %520 }
 0xe62   :  { %v522_v29 = vsel %vm518_vm12, %v521_v27, %v500_v15  ;;  %v603_v15 = vxor.u32 2147483648, %v602_v13  ;;  %v623_v27 = vld [vmem:[#allocation2] ss:$0 sm:$0xff] }
 0xe63   :  { %v541_v30 = vmul.f32 %v537_v28, %v522_v29 }
 0xe65   :  { %542 = vadd.xlane.f32.xlu1 %v541_v30 }
 0xed4   :  { %v511_v31 = vpop.xlane.xlu0 %510 }
 0xed5   :  { %v512_v32 = vsel %vm496_vm11, %v511_v31, %v490_v18 }
 0xed6   :  { %v531_v33 = vmul.f32 %v515_v14, %v512_v32 }
 0xed8   :  { %532 = vadd.xlane.f32.xlu0 %v531_v33  ;;  %v525_v34 = vpop.xlane.xlu0 %524  ;;  %v529_v35 = vpop.xlane.xlu1 %528 }
 0xed9   :  { %v526_v36 = vsel %vm518_vm12, %v525_v34, %v504_v22  ;;  %v530_v37 = vsel %vm518_vm12, %v529_v35, %v508_v23 }
 0xeda   :  { %v545_v39 = vmul.f32 %v537_v28, %v526_v36  ;;  %v549_v41 = vmul.f32 %v537_v28, %v530_v37 }
 0xedc   :  { %546 = vadd.xlane.f32.xlu0 %v545_v39  ;;  %550 = vadd.xlane.f32.xlu1 %v549_v41 }
 0xef2   :  { %v543_v43 = vpop.xlane.xlu1 %542 }
 0xef3   :  { %v544_v47 = vsel %vm540_vm13, %v543_v43, %v522_v29  ;;  %v624_v29 = vxor.u32 2147483648, %v623_v27 }
 0xef4   :  { %v563_v49 = vmul.f32 %v559_v45, %v544_v47 }
 0xef6   :  { %564 = vadd.xlane.f32.xlu1 %v563_v49 }
 0xf65   :  { %v533_v50 = vpop.xlane.xlu0 %532 }
 0xf66   :  { %v534_v51 = vsel %vm518_vm12, %v533_v50, %v512_v32 }
 0xf67   :  { %v553_v52 = vmul.f32 %v537_v28, %v534_v51 }
 0xf69   :  { %554 = vadd.xlane.f32.xlu0 %v553_v52  ;;  %v547_v54 = vpop.xlane.xlu0 %546  ;;  %v551_v56 = vpop.xlane.xlu1 %550 }
 0xf6a   :  { %v548_v2 = vsel %vm540_vm13, %v547_v54, %v526_v36  ;;  %v552_v48 = vsel %vm540_vm13, %v551_v56, %v530_v37 }
 0xf6b   :  { %v567_v57 = vmul.f32 %v559_v45, %v548_v2  ;;  %v571_v58 = vmul.f32 %v559_v45, %v552_v48 }
 0xf6d   :  { %568 = vadd.xlane.f32.xlu0 %v567_v57  ;;  %572 = vadd.xlane.f32.xlu1 %v571_v58 }
 0xf83   :  { %v565_v60 = vpop.xlane.xlu1 %564 }
 0xf84   :  { %v566_v62 = vsel %vm562_vm14, %v565_v60, %v544_v47 }
 0xf85   :  { %v585_v63 = vmul.f32 %v581_v61, %v566_v62 }
 0xf87   :  { %586 = vadd.xlane.f32.xlu1 %v585_v63 }
 0xff6   :  { %v555_v0 = vpop.xlane.xlu0 %554 }
 0xff7   :  { %v556_v3 = vsel %vm540_vm13, %v555_v0, %v534_v51 }
 0xff8   :  { %v575_v4 = vmul.f32 %v559_v45, %v556_v3 }
 0xffa   :  { %576 = vadd.xlane.f32.xlu0 %v575_v4  ;;  %v569_v5 = vpop.xlane.xlu0 %568  ;;  %v573_v6 = vpop.xlane.xlu1 %572 }
 0xffb   :  { %v570_v9 = vsel %vm562_vm14, %v569_v5, %v548_v2  ;;  %v574_v10 = vsel %vm562_vm14, %v573_v6, %v552_v48 }
 0xffc   :  { %v589_v11 = vmul.f32 %v581_v61, %v570_v9  ;;  %v593_v12 = vmul.f32 %v581_v61, %v574_v10 }
 0xffe   :  { %590 = vadd.xlane.f32.xlu0 %v589_v11  ;;  %594 = vadd.xlane.f32.xlu1 %v593_v12 }
0x1014   :  { %v587_v14 = vpop.xlane.xlu1 %586 }
0x1015   :  { %v588_v16 = vsel %vm584_vm15, %v587_v14, %v566_v62 }
0x1016   :  { %v607_v17 = vmul.f32 %v603_v15, %v588_v16 }
0x1018   :  { %608 = vadd.xlane.f32.xlu1 %v607_v17 }
0x1087   :  { %v577_v18 = vpop.xlane.xlu0 %576 }
0x1088   :  { %v578_v19 = vsel %vm562_vm14, %v577_v18, %v556_v3 }
0x1089   :  { %v597_v20 = vmul.f32 %v581_v61, %v578_v19 }
0x108b   :  { %598 = vadd.xlane.f32.xlu0 %v597_v20  ;;  %v591_v21 = vpop.xlane.xlu0 %590  ;;  %v595_v22 = vpop.xlane.xlu1 %594 }
0x108c   :  { %v592_v23 = vsel %vm584_vm15, %v591_v21, %v570_v9  ;;  %v596_v24 = vsel %vm584_vm15, %v595_v22, %v574_v10 }
0x108d   :  { %v611_v25 = vmul.f32 %v603_v15, %v592_v23  ;;  %v615_v26 = vmul.f32 %v603_v15, %v596_v24 }
0x108f   :  { %612 = vadd.xlane.f32.xlu0 %v611_v25  ;;  %616 = vadd.xlane.f32.xlu1 %v615_v26 }
0x10a5   :  { %v609_v28 = vpop.xlane.xlu1 %608 }
0x10a6   :  { %v610_v30 = vsel %vm606_vm1, %v609_v28, %v588_v16 }
0x10a7   :  { %v628_v31 = vmul.f32 %v624_v29, %v610_v30 }
0x10a9   :  { %629 = vadd.xlane.f32.xlu1 %v628_v31 }
0x1118   :  { %v599_v32 = vpop.xlane.xlu0 %598 }
0x1119   :  { %v600_v33 = vsel %vm584_vm15, %v599_v32, %v578_v19 }
0x111a   :  { %v619_v34 = vmul.f32 %v603_v15, %v600_v33 }
0x111c   :  { %620 = vadd.xlane.f32.xlu0 %v619_v34  ;;  %v613_v35 = vpop.xlane.xlu0 %612  ;;  %v617_v36 = vpop.xlane.xlu1 %616 }
0x111d   :  { %v614_v37 = vsel %vm606_vm1, %v613_v35, %v592_v23  ;;  %v618_v39 = vsel %vm606_vm1, %v617_v36, %v596_v24 }
0x111e   :  { %v632_v41 = vmul.f32 %v624_v29, %v614_v37  ;;  %v636_v42 = vmul.f32 %v624_v29, %v618_v39 }
0x1120   :  { %633 = vadd.xlane.f32.xlu0 %v632_v41  ;;  %637 = vadd.xlane.f32.xlu1 %v636_v42 }
0x1136   :  { %v630_v43 = vpop.xlane.xlu1 %629 }
0x1137   :  { %v631_v45 = vsel %vm627_vm2, %v630_v43, %v610_v30 }
0x1138   :  { %v645_v47 = vmul.f32 %v896_v40, %v631_v45 }
0x113a   :  { %v647_v49 = vsel %vm646_vm3, %v631_v45, %v645_v47 }
0x113b   :  { %701 = vst [vmem:[%s1004_s1] sm:$0xff] %v647_v49 }
0x11a9   :  { %v621_v50 = vpop.xlane.xlu0 %620 }
0x11aa   :  { %v622_v51 = vsel %vm606_vm1, %v621_v50, %v600_v33 }
0x11ab   :  { %v640_v52 = vmul.f32 %v624_v29, %v622_v51 }
0x11ad   :  { %641 = vadd.xlane.f32.xlu0 %v640_v52  ;;  %v634_v54 = vpop.xlane.xlu0 %633  ;;  %v638_v56 = vpop.xlane.xlu1 %637 }
0x11ae   :  { %v635_v2 = vsel %vm627_vm2, %v634_v54, %v614_v37  ;;  %v639_v40 = vsel %vm627_vm2, %v638_v56, %v618_v39 }
0x11af   :  { %v650_v38 = vmul.f32 %v824_v55, %v635_v2  ;;  %v656_v48 = vmul.f32 %v778_v46, %v639_v40 }
0x11b1   :  { %v652_v57 = vsel %vm651_vm5, %v635_v2, %v650_v38  ;;  %v658_v58 = vsel %vm657_vm4, %v639_v40, %v656_v48 }
0x11b2   :  { %703 = vst [vmem:[%s1004_s1 + $0x8] sm:$0xff] %v652_v57  ;;  %705 = vst [vmem:[%s1004_s1 + $0x10] sm:$0xff] %v658_v58 }
0x123a   :  { %v642_v59 = vpop.xlane.xlu0 %641 }
0x123b   :  { %v643_v55 = vsel %vm627_vm2, %v642_v59, %v622_v51 }
0x123c   :  { %v662_v46 = vmul.f32 %v757_v8, %v643_v55 }
0x123e   :  { %v664_v44 = vsel %vm663_vm6, %v643_v55, %v662_v46 }
0x123f   :  { %707 = vst [vmem:[%s1004_s1 + $0x18] sm:$0xff] %v664_v44 }

// kernel: custom-call.13
= control target key start
LH: loop header
LB: loop body
LE: loop exit
PB: predicated region body
PF: predicated region fallthrough
CT: control target
= control target key end

     0   :  { %v46_v0 = vlaneseq  ;;  %v730_v9 = vmov -1.0   ;;  %v731_v53 = vmov 0.0   ;;  %s884_s0 = inlined_call_operand.vmem [shape: f32[1,32,32], index: 0, kind: input, shape index: {}]   ;;  %s885_s1 = inlined_call_operand.vmem [shape: f32[1,32,32], index: 1, kind: output, shape index: {}]  }
   0x1   :  { %v35_v1 = vld [vmem:[%s884_s0] sm:$0xff]  ;;  %v37_v36 = vld [vmem:[%s884_s0 + $0x8] sm:$0xff] }
   0x2   :  { %v745_v2 = vand.u32 127, %v46_v0  ;;  %v747_v3 = vshrl.u32 %v46_v0, 7 }
   0x4   :  { %vm52_vm0 = vcmp.eq.s32.totalorder %v747_v3, %v745_v2  ;;  %vm48_vm1 = vcmp.lt.s32.totalorder %v745_v2, 32  ;;  %vm57_vm2 = vcmp.ge.s32.totalorder %v747_v3, %v745_v2  ;;  %vm119_vm4 = vcmp.eq.s32.totalorder %v745_v2, 0 }
   0x5   :  { %v54_v4 = vsel %vm52_vm0, %v35_v1, 0.0  ;;  %vm58_vm3 = vmand %vm57_vm2, %vm48_vm1  ;;  %vm116_vm5 = vcmp.eq.s32.totalorder %v745_v2, %v747_v3  ;;  %v120_v10 = vsel %vm119_vm4, 1.0, %v730_v9  ;;  %vm148_vm6 = vcmp.eq.s32.totalorder %v745_v2, 1 }
   0x6   :  { %55 = vadd.xlane.f32.xlu0 %v54_v4  ;;  %v59_v6 = vsel %vm58_vm3, %v35_v1, 0.0  ;;  %v121_v11 = vsel %vm116_vm5, %v120_v10, 0.0  ;;  %vm158_vm7 = vcmp.eq.s32.totalorder %v745_v2, 2  ;;  %vm168_vm8 = vcmp.eq.s32.totalorder %v745_v2, 3 }
   0x7   :  { %vm178_vm9 = vcmp.eq.s32.totalorder %v745_v2, 4  ;;  %v67_v31 = vadd.s32 8, %v747_v3  ;;  %vm188_vm11 = vcmp.eq.s32.totalorder %v745_v2, 5  ;;  %vm198_vm14 = vcmp.eq.s32.totalorder %v745_v2, 6 }
   0x8   :  { %vm208_vm0 = vcmp.eq.s32.totalorder %v745_v2, 7  ;;  %vm218_vm2 = vcmp.eq.s32.totalorder %v745_v2, 8  ;;  %vm232_vm3 = vcmp.eq.s32.totalorder %v745_v2, 9  ;;  %vm246_vm4 = vcmp.eq.s32.totalorder %v745_v2, 10 }
   0x9   :  { %vm68_vm10 = vcmp.eq.s32.totalorder %v67_v31, %v745_v2  ;;  %vm73_vm12 = vcmp.ge.s32.totalorder %v67_v31, %v745_v2  ;;  %vm127_vm15 = vcmp.eq.s32.totalorder %v745_v2, %v67_v31  ;;  %vm260_vm5 = vcmp.eq.s32.totalorder %v745_v2, 11 }
   0xa   :  { %v70_v37 = vsel %vm68_vm10, %v37_v36, 0.0  ;;  %vm74_vm13 = vmand %vm73_vm12, %vm48_vm1  ;;  %v128_v54 = vsel %vm127_vm15, -1.0, %v731_v53  ;;  %vm316_vm12 = vcmp.eq.s32.totalorder %v745_v2, 15  ;;  %vm348_vm15 = vcmp.eq.s32.totalorder %v745_v2, 17 }
   0xb   :  { %v75_v44 = vsel %vm74_vm13, %v37_v36, 0.0 }
  0x93   :  { %v751_v5 = vpop.xlane.xlu0 %55 }
  0x94   :  { %722 = vrcp.f32 %v751_v5 }
  0x9e   :  { %v759_v7 = vpop.eup %722 }
  0x9f   :  { %v61_v8 = vmul.f32 %v759_v7, %v59_v6 }
  0xa1   :  { %62 = vst [vmem:[#allocation2] sm:$0xff] %v61_v8 }
  0xa8   :  { %v144_v12 = vld [vmem:[#allocation2 + $0x1] ss:$0 sm:$0xff]  ;;  %v154_v15 = vld [vmem:[#allocation2 + $0x2] ss:$0 sm:$0xff]  ;;  %v164_v20 = vld [vmem:[#allocation2 + $0x3] ss:$0 sm:$0xff] }
  0xa9   :  { %v145_v13 = vxor.u32 2147483648, %v144_v12  ;;  %v155_v17 = vxor.u32 2147483648, %v154_v15  ;;  %v165_v22 = vxor.u32 2147483648, %v164_v20  ;;  %v174_v25 = vld [vmem:[#allocation2 + $0x4] ss:$0 sm:$0xff] }
  0xaa   :  { %v175_v27 = vxor.u32 2147483648, %v174_v25  ;;  %v184_v30 = vld [vmem:[#allocation2 + $0x5] ss:$0 sm:$0xff]  ;;  %v194_v38 = vld [vmem:[#allocation2 + $0x6] ss:$0 sm:$0xff] }
  0xab   :  { %v149_v14 = vmul.f32 %v145_v13, %v121_v11  ;;  %v185_v33 = vxor.u32 2147483648, %v184_v30  ;;  %v195_v40 = vxor.u32 2147483648, %v194_v38  ;;  %v204_v47 = vld [vmem:[#allocation2 + $0x7] ss:$0 sm:$0xff] }
  0xac   :  { %v205_v50 = vxor.u32 2147483648, %v204_v47  ;;  %v83_v47 = vadd.s32 16, %v747_v3 }
  0xad   :  { %150 = vadd.xlane.f32.xlu0 %v149_v14 }
  0xae   :  { %vm89_vm10 = vcmp.ge.s32.totalorder %v83_v47, %v745_v2  ;;  %vm134_vm13 = vcmp.eq.s32.totalorder %v745_v2, %v83_v47 }
 0x13a   :  { %v151_v16 = vpop.xlane.xlu0 %150 }
 0x13b   :  { %v152_v18 = vsel %vm148_vm6, %v151_v16, %v121_v11  ;;  %vm274_vm6 = vcmp.eq.s32.totalorder %v745_v2, 12 }
 0x13c   :  { %v159_v19 = vmul.f32 %v155_v17, %v152_v18 }
 0x13e   :  { %160 = vadd.xlane.f32.xlu1 %v159_v19 }
 0x1cb   :  { %v161_v21 = vpop.xlane.xlu1 %160 }
 0x1cc   :  { %v162_v23 = vsel %vm158_vm7, %v161_v21, %v152_v18  ;;  %vm288_vm7 = vcmp.eq.s32.totalorder %v745_v2, 13 }
 0x1cd   :  { %v169_v24 = vmul.f32 %v165_v22, %v162_v23 }
 0x1cf   :  { %170 = vadd.xlane.f32.xlu1 %v169_v24 }
 0x25c   :  { %v171_v26 = vpop.xlane.xlu1 %170 }
 0x25d   :  { %v172_v28 = vsel %vm168_vm8, %v171_v26, %v162_v23  ;;  %vm84_vm8 = vcmp.eq.s32.totalorder %v83_v47, %v745_v2 }
 0x25e   :  { %v179_v29 = vmul.f32 %v175_v27, %v172_v28 }
 0x260   :  { %180 = vadd.xlane.f32.xlu0 %v179_v29 }
 0x2ed   :  { %v181_v32 = vpop.xlane.xlu0 %180 }
 0x2ee   :  { %v182_v34 = vsel %vm178_vm9, %v181_v32, %v172_v28  ;;  %vm302_vm9 = vcmp.eq.s32.totalorder %v745_v2, 14 }
 0x2ef   :  { %v189_v35 = vmul.f32 %v185_v33, %v182_v34 }
 0x2f1   :  { %190 = vadd.xlane.f32.xlu1 %v189_v35 }
 0x2f5   :  { %71 = vadd.xlane.f32.xlu1 %v70_v37 }
 0x37e   :  { %v191_v39 = vpop.xlane.xlu1 %190 }
 0x37f   :  { %v192_v41 = vsel %vm188_vm11, %v191_v39, %v182_v34  ;;  %vm90_vm11 = vmand %vm89_vm10, %vm48_vm1  ;;  %vm474_vm10 = vcmp.eq.s32.totalorder %v745_v2, 24 }
 0x380   :  { %v199_v42 = vmul.f32 %v195_v40, %v192_v41 }
 0x382   :  { %200 = vadd.xlane.f32.xlu0 %v199_v42  ;;  %v775_v43 = vpop.xlane.xlu1 %71 }
 0x383   :  { %724 = vrcp.f32 %v775_v43 }
 0x38d   :  { %v781_v45 = vpop.eup %724 }
 0x38e   :  { %v77_v46 = vmul.f32 %v781_v45, %v75_v44 }
 0x390   :  { %78 = vst [vmem:[#allocation2 + $0x8] sm:$0xff] %v77_v46 }
 0x397   :  { %v214_v48 = vld [vmem:[#allocation2 + $0x8] ss:$0 sm:$0xff]  ;;  %v228_v59 = vld [vmem:[#allocation2 + $0x9] ss:$0 sm:$0xff]  ;;  %v242_v6 = vld [vmem:[#allocation2 + $0xa] ss:$0 sm:$0xff] }
 0x398   :  { %v215_v51 = vxor.u32 2147483648, %v214_v48  ;;  %v229_v62 = vxor.u32 2147483648, %v228_v59  ;;  %v243_v10 = vxor.u32 2147483648, %v242_v6  ;;  %v256_v15 = vld [vmem:[#allocation2 + $0xb] ss:$0 sm:$0xff] }
 0x399   :  { %v257_v18 = vxor.u32 2147483648, %v256_v15  ;;  %v270_v23 = vld [vmem:[#allocation2 + $0xc] ss:$0 sm:$0xff]  ;;  %v284_v31 = vld [vmem:[#allocation2 + $0xd] ss:$0 sm:$0xff] }
 0x39a   :  { %v223_v56 = vmul.f32 %v215_v51, %v128_v54  ;;  %v271_v26 = vxor.u32 2147483648, %v270_v23  ;;  %v285_v34 = vxor.u32 2147483648, %v284_v31  ;;  %v298_v39 = vld [vmem:[#allocation2 + $0xe] ss:$0 sm:$0xff] }
 0x39b   :  { %v299_v42 = vxor.u32 2147483648, %v298_v39 }
 0x40f   :  { %v201_v49 = vpop.xlane.xlu0 %200 }
 0x410   :  { %v202_v52 = vsel %vm198_vm14, %v201_v49, %v192_v41  ;;  %vm330_vm14 = vcmp.eq.s32.totalorder %v745_v2, 16 }
 0x411   :  { %v209_v55 = vmul.f32 %v205_v50, %v202_v52 }
 0x413   :  { %210 = vadd.xlane.f32.xlu0 %v209_v55  ;;  %v312_v55 = vld [vmem:[#allocation2 + $0xf] ss:$0 sm:$0xff] }
 0x417   :  { %224 = vadd.xlane.f32.xlu0 %v223_v56 }
 0x4a0   :  { %v211_v57 = vpop.xlane.xlu0 %210 }
 0x4a1   :  { %v212_v58 = vsel %vm208_vm0, %v211_v57, %v202_v52  ;;  %v313_v57 = vxor.u32 2147483648, %v312_v55  ;;  %vm366_vm0 = vcmp.eq.s32.totalorder %v745_v2, 18 }
 0x4a2   :  { %v219_v60 = vmul.f32 %v215_v51, %v212_v58  ;;  %v39_v51 = vld [vmem:[%s884_s0 + $0x10] sm:$0xff] }
 0x4a4   :  { %v225_v61 = vpop.xlane.xlu0 %224  ;;  %220 = vadd.xlane.f32.xlu1 %v219_v60 }
 0x4a5   :  { %v226_v63 = vsel %vm218_vm2, %v225_v61, %v128_v54  ;;  %v86_v54 = vsel %vm84_vm8, %v39_v51, 0.0 }
 0x4a6   :  { %v237_v0 = vmul.f32 %v229_v62, %v226_v63 }
 0x4a8   :  { %238 = vadd.xlane.f32.xlu0 %v237_v0 }
 0x531   :  { %v221_v1 = vpop.xlane.xlu1 %220 }
 0x532   :  { %v222_v4 = vsel %vm218_vm2, %v221_v1, %v212_v58  ;;  %vm384_vm2 = vcmp.eq.s32.totalorder %v745_v2, 19 }
 0x533   :  { %v233_v8 = vmul.f32 %v229_v62, %v222_v4 }
 0x535   :  { %v239_v9 = vpop.xlane.xlu0 %238  ;;  %234 = vadd.xlane.f32.xlu1 %v233_v8 }
 0x536   :  { %v240_v11 = vsel %vm232_vm3, %v239_v9, %v226_v63  ;;  %v91_v63 = vsel %vm90_vm11, %v39_v51, 0.0  ;;  %vm496_vm11 = vcmp.eq.s32.totalorder %v745_v2, 25 }
 0x537   :  { %v251_v12 = vmul.f32 %v243_v10, %v240_v11 }
 0x539   :  { %252 = vadd.xlane.f32.xlu0 %v251_v12 }
 0x5c2   :  { %v235_v13 = vpop.xlane.xlu1 %234 }
 0x5c3   :  { %v236_v14 = vsel %vm232_vm3, %v235_v13, %v222_v4  ;;  %vm402_vm3 = vcmp.eq.s32.totalorder %v745_v2, 20 }
 0x5c4   :  { %v247_v16 = vmul.f32 %v243_v10, %v236_v14 }
 0x5c6   :  { %v253_v17 = vpop.xlane.xlu0 %252  ;;  %248 = vadd.xlane.f32.xlu1 %v247_v16 }
 0x5c7   :  { %v254_v19 = vsel %vm246_vm4, %v253_v17, %v240_v11 }
 0x5c8   :  { %v265_v20 = vmul.f32 %v257_v18, %v254_v19 }
 0x5ca   :  { %266 = vadd.xlane.f32.xlu0 %v265_v20 }
 0x653   :  { %v249_v21 = vpop.xlane.xlu1 %248 }
 0x654   :  { %v250_v22 = vsel %vm246_vm4, %v249_v21, %v236_v14  ;;  %v135_v14 = vsel %vm134_vm13, -1.0, %v731_v53  ;;  %vm420_vm4 = vcmp.eq.s32.totalorder %v745_v2, 21  ;;  %vm540_vm13 = vcmp.eq.s32.totalorder %v745_v2, 27 }
 0x655   :  { %v261_v24 = vmul.f32 %v257_v18, %v250_v22 }
 0x657   :  { %v267_v25 = vpop.xlane.xlu0 %266  ;;  %262 = vadd.xlane.f32.xlu1 %v261_v24 }
 0x658   :  { %v268_v27 = vsel %vm260_vm5, %v267_v25, %v254_v19 }
 0x659   :  { %v279_v28 = vmul.f32 %v271_v26, %v268_v27 }
 0x65b   :  { %280 = vadd.xlane.f32.xlu0 %v279_v28 }
 0x6e4   :  { %v263_v29 = vpop.xlane.xlu1 %262 }
 0x6e5   :  { %v264_v30 = vsel %vm260_vm5, %v263_v29, %v250_v22 }
 0x6e6   :  { %v275_v32 = vmul.f32 %v271_v26, %v264_v30 }
 0x6e8   :  { %v281_v33 = vpop.xlane.xlu0 %280  ;;  %276 = vadd.xlane.f32.xlu1 %v275_v32 }
 0x6e9   :  { %v282_v35 = vsel %vm274_vm6, %v281_v33, %v268_v27 }
 0x6ea   :  { %v293_v36 = vmul.f32 %v285_v34, %v282_v35 }
 0x6ec   :  { %294 = vadd.xlane.f32.xlu0 %v293_v36 }
 0x775   :  { %v277_v37 = vpop.xlane.xlu1 %276 }
 0x776   :  { %v278_v38 = vsel %vm274_vm6, %v277_v37, %v264_v30  ;;  %vm438_vm6 = vcmp.eq.s32.totalorder %v745_v2, 22 }
 0x777   :  { %v289_v40 = vmul.f32 %v285_v34, %v278_v38 }
 0x779   :  { %v295_v41 = vpop.xlane.xlu0 %294  ;;  %290 = vadd.xlane.f32.xlu1 %v289_v40 }
 0x77a   :  { %v296_v44 = vsel %vm288_vm7, %v295_v41, %v282_v35 }
 0x77b   :  { %v307_v46 = vmul.f32 %v299_v42, %v296_v44 }
 0x77d   :  { %308 = vadd.xlane.f32.xlu0 %v307_v46 }
 0x806   :  { %v291_v48 = vpop.xlane.xlu1 %290 }
 0x807   :  { %v292_v49 = vsel %vm288_vm7, %v291_v48, %v278_v38 }
 0x808   :  { %v303_v50 = vmul.f32 %v299_v42, %v292_v49 }
 0x80a   :  { %v309_v52 = vpop.xlane.xlu0 %308  ;;  %304 = vadd.xlane.f32.xlu1 %v303_v50 }
 0x80b   :  { %v310_v56 = vsel %vm302_vm9, %v309_v52, %v296_v44 }
 0x80c   :  { %v321_v58 = vmul.f32 %v313_v57, %v310_v56 }
 0x80e   :  { %87 = vadd.xlane.f32.xlu1 %v86_v54 }
 0x812   :  { %322 = vadd.xlane.f32.xlu1 %v321_v58 }
 0x897   :  { %v305_v59 = vpop.xlane.xlu1 %304 }
 0x898   :  { %v306_v60 = vsel %vm302_vm9, %v305_v59, %v292_v49 }
 0x899   :  { %v317_v61 = vmul.f32 %v313_v57, %v306_v60 }
 0x89b   :  { %318 = vadd.xlane.f32.xlu0 %v317_v61  ;;  %v800_v62 = vpop.xlane.xlu1 %87 }
 0x89c   :  { %726 = vrcp.f32 %v800_v62 }
 0x89f   :  { %v323_v4 = vpop.xlane.xlu1 %322 }
 0x8a0   :  { %v324_v9 = vsel %vm316_vm12, %v323_v4, %v310_v56 }
 0x8a6   :  { %v806_v0 = vpop.eup %726 }
 0x8a7   :  { %v93_v1 = vmul.f32 %v806_v0, %v91_v63 }
 0x8a9   :  { %94 = vst [vmem:[#allocation2 + $0x10] sm:$0xff] %v93_v1 }
 0x8b0   :  { %v326_v6 = vld [vmem:[#allocation2 + $0x10] ss:$0 sm:$0xff]  ;;  %v344_v16 = vld [vmem:[#allocation2 + $0x11] ss:$0 sm:$0xff]  ;;  %v362_v27 = vld [vmem:[#allocation2 + $0x12] ss:$0 sm:$0xff] }
 0x8b1   :  { %v327_v8 = vxor.u32 2147483648, %v326_v6  ;;  %v345_v18 = vxor.u32 2147483648, %v344_v16  ;;  %v363_v29 = vxor.u32 2147483648, %v362_v27  ;;  %v380_v38 = vld [vmem:[#allocation2 + $0x13] ss:$0 sm:$0xff] }
 0x8b2   :  { %v381_v40 = vxor.u32 2147483648, %v380_v38  ;;  %v398_v51 = vld [vmem:[#allocation2 + $0x14] ss:$0 sm:$0xff]  ;;  %v416_v1 = vld [vmem:[#allocation2 + $0x15] ss:$0 sm:$0xff] }
 0x8b3   :  { %v335_v10 = vmul.f32 %v327_v8, %v324_v9  ;;  %v339_v15 = vmul.f32 %v327_v8, %v135_v14  ;;  %v399_v54 = vxor.u32 2147483648, %v398_v51  ;;  %v417_v6 = vxor.u32 2147483648, %v416_v1  ;;  %v434_v16 = vld [vmem:[#allocation2 + $0x16] ss:$0 sm:$0xff] }
 0x8b5   :  { %336 = vadd.xlane.f32.xlu1 %v335_v10 }
 0x928   :  { %v319_v11 = vpop.xlane.xlu0 %318 }
 0x929   :  { %v320_v12 = vsel %vm316_vm12, %v319_v11, %v306_v60  ;;  %vm518_vm12 = vcmp.eq.s32.totalorder %v745_v2, 26 }
 0x92a   :  { %v331_v13 = vmul.f32 %v327_v8, %v320_v12 }
 0x92c   :  { %332 = vadd.xlane.f32.xlu0 %v331_v13 }
 0x930   :  { %340 = vadd.xlane.f32.xlu0 %v339_v15 }
 0x942   :  { %v337_v17 = vpop.xlane.xlu1 %336 }
 0x943   :  { %v338_v19 = vsel %vm330_vm14, %v337_v17, %v324_v9  ;;  %v99_v17 = vadd.s32 24, %v747_v3 }
 0x944   :  { %v353_v20 = vmul.f32 %v345_v18, %v338_v19 }
 0x945   :  { %vm100_vm5 = vcmp.eq.s32.totalorder %v99_v17, %v745_v2  ;;  %vm105_vm7 = vcmp.ge.s32.totalorder %v99_v17, %v745_v2  ;;  %vm141_vm9 = vcmp.eq.s32.totalorder %v745_v2, %v99_v17 }
 0x946   :  { %354 = vadd.xlane.f32.xlu0 %v353_v20  ;;  %vm106_vm8 = vmand %vm105_vm7, %vm48_vm1  ;;  %vm456_vm1 = vcmp.eq.s32.totalorder %v745_v2, 23 }
 0x9b9   :  { %v333_v21 = vpop.xlane.xlu0 %332 }
 0x9ba   :  { %v334_v22 = vsel %vm330_vm14, %v333_v21, %v320_v12 }
 0x9bb   :  { %v349_v23 = vmul.f32 %v345_v18, %v334_v22 }
 0x9bd   :  { %v341_v24 = vpop.xlane.xlu0 %340  ;;  %350 = vadd.xlane.f32.xlu1 %v349_v23 }
 0x9be   :  { %v342_v25 = vsel %vm330_vm14, %v341_v24, %v135_v14  ;;  %vm562_vm14 = vcmp.eq.s32.totalorder %v745_v2, 28 }
 0x9bf   :  { %v357_v26 = vmul.f32 %v345_v18, %v342_v25 }
 0x9c1   :  { %358 = vadd.xlane.f32.xlu1 %v357_v26 }
 0x9d3   :  { %v355_v28 = vpop.xlane.xlu0 %354 }
 0x9d4   :  { %v356_v30 = vsel %vm348_vm15, %v355_v28, %v338_v19  ;;  %v435_v19 = vxor.u32 2147483648, %v434_v16 }
 0x9d5   :  { %v371_v31 = vmul.f32 %v363_v29, %v356_v30 }
 0x9d7   :  { %372 = vadd.xlane.f32.xlu1 %v371_v31 }
 0xa4a   :  { %v351_v32 = vpop.xlane.xlu1 %350 }
 0xa4b   :  { %v352_v33 = vsel %vm348_vm15, %v351_v32, %v334_v22  ;;  %v41_v22 = vld [vmem:[%s884_s0 + $0x18] sm:$0xff] }
 0xa4c   :  { %v367_v34 = vmul.f32 %v363_v29, %v352_v33  ;;  %v102_v23 = vsel %vm100_vm5, %v41_v22, 0.0  ;;  %vm647_vm5 = vweird.f32 %v751_v5 }
 0xa4e   :  { %368 = vadd.xlane.f32.xlu0 %v367_v34  ;;  %v359_v35 = vpop.xlane.xlu1 %358 }
 0xa4f   :  { %v360_v36 = vsel %vm348_vm15, %v359_v35, %v342_v25  ;;  %v107_v35 = vsel %vm106_vm8, %v41_v22, 0.0  ;;  %vm584_vm15 = vcmp.eq.s32.totalorder %v745_v2, 29 }
 0xa50   :  { %v375_v37 = vmul.f32 %v363_v29, %v360_v36  ;;  %v452_v29 = vld [vmem:[#allocation2 + $0x17] ss:$0 sm:$0xff] }
 0xa51   :  { %v453_v31 = vxor.u32 2147483648, %v452_v29 }
 0xa52   :  { %376 = vadd.xlane.f32.xlu0 %v375_v37 }
 0xa64   :  { %v373_v39 = vpop.xlane.xlu1 %372 }
 0xa65   :  { %v374_v41 = vsel %vm366_vm0, %v373_v39, %v356_v30 }
 0xa66   :  { %v389_v42 = vmul.f32 %v381_v40, %v374_v41 }
 0xa68   :  { %390 = vadd.xlane.f32.xlu0 %v389_v42 }
 0xadb   :  { %v369_v44 = vpop.xlane.xlu0 %368 }
 0xadc   :  { %v370_v46 = vsel %vm366_vm0, %v369_v44, %v352_v33 }
 0xadd   :  { %v385_v47 = vmul.f32 %v381_v40, %v370_v46 }
 0xadf   :  { %386 = vadd.xlane.f32.xlu1 %v385_v47  ;;  %v377_v48 = vpop.xlane.xlu0 %376 }
 0xae0   :  { %v378_v49 = vsel %vm366_vm0, %v377_v48, %v360_v36  ;;  %vm606_vm0 = vcmp.eq.s32.totalorder %v745_v2, 30 }
 0xae1   :  { %v393_v50 = vmul.f32 %v381_v40, %v378_v49 }
 0xae3   :  { %394 = vadd.xlane.f32.xlu1 %v393_v50  ;;  %v142_v50 = vsel %vm141_vm9, -1.0, %v731_v53 }
 0xaf5   :  { %v391_v52 = vpop.xlane.xlu0 %390 }
 0xaf6   :  { %v392_v55 = vsel %vm384_vm2, %v391_v52, %v374_v41 }
 0xaf7   :  { %v407_v56 = vmul.f32 %v399_v54, %v392_v55 }
 0xaf9   :  { %408 = vadd.xlane.f32.xlu1 %v407_v56 }
 0xb6c   :  { %v387_v57 = vpop.xlane.xlu1 %386 }
 0xb6d   :  { %v388_v58 = vsel %vm384_vm2, %v387_v57, %v370_v46 }
 0xb6e   :  { %v403_v59 = vmul.f32 %v399_v54, %v388_v58 }
 0xb70   :  { %404 = vadd.xlane.f32.xlu0 %v403_v59  ;;  %v395_v60 = vpop.xlane.xlu1 %394 }
 0xb71   :  { %v396_v61 = vsel %vm384_vm2, %v395_v60, %v378_v49  ;;  %vm628_vm2 = vcmp.eq.s32.totalorder %v745_v2, 31 }
 0xb72   :  { %v411_v63 = vmul.f32 %v399_v54, %v396_v61 }
 0xb74   :  { %412 = vadd.xlane.f32.xlu0 %v411_v63 }
 0xb86   :  { %v409_v4 = vpop.xlane.xlu1 %408 }
 0xb87   :  { %v410_v8 = vsel %vm402_vm3, %v409_v4, %v392_v55 }
 0xb88   :  { %v425_v9 = vmul.f32 %v417_v6, %v410_v8 }
 0xb8a   :  { %426 = vadd.xlane.f32.xlu0 %v425_v9 }
 0xbfd   :  { %v405_v10 = vpop.xlane.xlu0 %404 }
 0xbfe   :  { %v406_v11 = vsel %vm402_vm3, %v405_v10, %v388_v58 }
 0xbff   :  { %v421_v12 = vmul.f32 %v417_v6, %v406_v11 }
 0xc01   :  { %422 = vadd.xlane.f32.xlu1 %v421_v12  ;;  %v413_v13 = vpop.xlane.xlu0 %412 }
 0xc02   :  { %v414_v14 = vsel %vm402_vm3, %v413_v13, %v396_v61  ;;  %vm652_vm3 = vweird.f32 %v775_v43 }
 0xc03   :  { %v429_v15 = vmul.f32 %v417_v6, %v414_v14 }
 0xc05   :  { %430 = vadd.xlane.f32.xlu1 %v429_v15 }
 0xc17   :  { %v427_v18 = vpop.xlane.xlu0 %426 }
 0xc18   :  { %v428_v20 = vsel %vm420_vm4, %v427_v18, %v410_v8 }
 0xc19   :  { %v443_v21 = vmul.f32 %v435_v19, %v428_v20 }
 0xc1b   :  { %444 = vadd.xlane.f32.xlu1 %v443_v21 }
 0xc1f   :  { %103 = vadd.xlane.f32.xlu1 %v102_v23 }
 0xc8e   :  { %v423_v24 = vpop.xlane.xlu1 %422 }
 0xc8f   :  { %v424_v25 = vsel %vm420_vm4, %v423_v24, %v406_v11 }
 0xc90   :  { %v439_v3 = vmul.f32 %v435_v19, %v424_v25 }
 0xc92   :  { %440 = vadd.xlane.f32.xlu0 %v439_v3  ;;  %v431_v26 = vpop.xlane.xlu1 %430 }
 0xc93   :  { %v432_v27 = vsel %vm420_vm4, %v431_v26, %v414_v14 }
 0xc94   :  { %v447_v28 = vmul.f32 %v435_v19, %v432_v27 }
 0xc96   :  { %448 = vadd.xlane.f32.xlu0 %v447_v28 }
 0xca8   :  { %v445_v30 = vpop.xlane.xlu1 %444 }
 0xca9   :  { %v446_v32 = vsel %vm438_vm6, %v445_v30, %v428_v20 }
 0xcaa   :  { %v461_v33 = vmul.f32 %v453_v31, %v446_v32 }
 0xcac   :  { %462 = vadd.xlane.f32.xlu1 %v461_v33  ;;  %v832_v34 = vpop.xlane.xlu1 %103 }
 0xcad   :  { %728 = vrcp.f32 %v832_v34  ;;  %vm664_vm4 = vweird.f32 %v832_v34 }
 0xcb7   :  { %v838_v36 = vpop.eup %728 }
 0xcb8   :  { %v109_v37 = vmul.f32 %v838_v36, %v107_v35 }
 0xcba   :  { %110 = vst [vmem:[#allocation2 + $0x18] sm:$0xff] %v109_v37 }
 0xcc1   :  { %v470_v46 = vld [vmem:[#allocation2 + $0x18] ss:$0 sm:$0xff]  ;;  %v492_v60 = vld [vmem:[#allocation2 + $0x19] ss:$0 sm:$0xff]  ;;  %v514_v15 = vld [vmem:[#allocation2 + $0x1a] ss:$0 sm:$0xff] }
 0xcc2   :  { %v471_v47 = vxor.u32 2147483648, %v470_v46  ;;  %v493_v63 = vxor.u32 2147483648, %v492_v60  ;;  %v515_v17 = vxor.u32 2147483648, %v514_v15  ;;  %v536_v28 = vld [vmem:[#allocation2 + $0x1b] ss:$0 sm:$0xff] }
 0xcc3   :  { %v537_v30 = vxor.u32 2147483648, %v536_v28  ;;  %v558_v46 = vld [vmem:[#allocation2 + $0x1c] ss:$0 sm:$0xff] }
 0xcc4   :  { %v487_v52 = vmul.f32 %v471_v47, %v142_v50 }
 0xd1f   :  { %v441_v38 = vpop.xlane.xlu0 %440 }
 0xd20   :  { %v442_v39 = vsel %vm438_vm6, %v441_v38, %v424_v25 }
 0xd21   :  { %v457_v40 = vmul.f32 %v453_v31, %v442_v39 }
 0xd23   :  { %458 = vadd.xlane.f32.xlu0 %v457_v40  ;;  %v449_v41 = vpop.xlane.xlu0 %448 }
 0xd24   :  { %v450_v42 = vsel %vm438_vm6, %v449_v41, %v432_v27  ;;  %vm658_vm6 = vweird.f32 %v800_v62 }
 0xd25   :  { %v465_v44 = vmul.f32 %v453_v31, %v450_v42 }
 0xd27   :  { %466 = vadd.xlane.f32.xlu0 %v465_v44 }
 0xd39   :  { %v463_v48 = vpop.xlane.xlu1 %462 }
 0xd3a   :  { %v464_v49 = vsel %vm456_vm1, %v463_v48, %v446_v32  ;;  %v559_v48 = vxor.u32 2147483648, %v558_v46 }
 0xd3b   :  { %v479_v51 = vmul.f32 %v471_v47, %v464_v49 }
 0xd3d   :  { %480 = vadd.xlane.f32.xlu0 %v479_v51 }
 0xd41   :  { %488 = vadd.xlane.f32.xlu0 %v487_v52 }
 0xdb0   :  { %v459_v54 = vpop.xlane.xlu0 %458 }
 0xdb1   :  { %v460_v55 = vsel %vm456_vm1, %v459_v54, %v442_v39 }
 0xdb2   :  { %v475_v56 = vmul.f32 %v471_v47, %v460_v55 }
 0xdb4   :  { %v467_v57 = vpop.xlane.xlu0 %466  ;;  %476 = vadd.xlane.f32.xlu1 %v475_v56 }
 0xdb5   :  { %v468_v58 = vsel %vm456_vm1, %v467_v57, %v450_v42 }
 0xdb6   :  { %v483_v59 = vmul.f32 %v471_v47, %v468_v58 }
 0xdb8   :  { %484 = vadd.xlane.f32.xlu1 %v483_v59 }
 0xdca   :  { %v481_v61 = vpop.xlane.xlu0 %480 }
 0xdcb   :  { %v482_v1 = vsel %vm474_vm10, %v481_v61, %v464_v49  ;;  %v580_v61 = vld [vmem:[#allocation2 + $0x1d] ss:$0 sm:$0xff] }
 0xdcc   :  { %v501_v4 = vmul.f32 %v493_v63, %v482_v1 }
 0xdce   :  { %502 = vadd.xlane.f32.xlu0 %v501_v4  ;;  %v489_v53 = vpop.xlane.xlu0 %488 }
 0xdcf   :  { %v490_v6 = vsel %vm474_vm10, %v489_v53, %v142_v50 }
 0xdd0   :  { %v509_v8 = vmul.f32 %v493_v63, %v490_v6 }
 0xdd2   :  { %510 = vadd.xlane.f32.xlu0 %v509_v8 }
 0xe41   :  { %v477_v9 = vpop.xlane.xlu1 %476 }
 0xe42   :  { %v478_v10 = vsel %vm474_vm10, %v477_v9, %v460_v55 }
 0xe43   :  { %v497_v11 = vmul.f32 %v493_v63, %v478_v10 }
 0xe45   :  { %498 = vadd.xlane.f32.xlu1 %v497_v11  ;;  %v485_v12 = vpop.xlane.xlu1 %484 }
 0xe46   :  { %v486_v13 = vsel %vm474_vm10, %v485_v12, %v468_v58 }
 0xe47   :  { %v505_v14 = vmul.f32 %v493_v63, %v486_v13 }
 0xe49   :  { %506 = vadd.xlane.f32.xlu1 %v505_v14 }
 0xe5b   :  { %v503_v16 = vpop.xlane.xlu0 %502 }
 0xe5c   :  { %v504_v18 = vsel %vm496_vm11, %v503_v16, %v482_v1  ;;  %v581_v1 = vxor.u32 2147483648, %v580_v61  ;;  %v602_v16 = vld [vmem:[#allocation2 + $0x1e] ss:$0 sm:$0xff] }
 0xe5d   :  { %v523_v19 = vmul.f32 %v515_v17, %v504_v18 }
 0xe5f   :  { %524 = vadd.xlane.f32.xlu0 %v523_v19  ;;  %v511_v20 = vpop.xlane.xlu0 %510 }
 0xe60   :  { %v512_v21 = vsel %vm496_vm11, %v511_v20, %v490_v6 }
 0xe61   :  { %v531_v22 = vmul.f32 %v515_v17, %v512_v21 }
 0xe63   :  { %532 = vadd.xlane.f32.xlu0 %v531_v22 }
 0xed2   :  { %v499_v23 = vpop.xlane.xlu1 %498 }
 0xed3   :  { %v500_v24 = vsel %vm496_vm11, %v499_v23, %v478_v10 }
 0xed4   :  { %v519_v25 = vmul.f32 %v515_v17, %v500_v24 }
 0xed6   :  { %520 = vadd.xlane.f32.xlu1 %v519_v25  ;;  %v507_v3 = vpop.xlane.xlu1 %506 }
 0xed7   :  { %v508_v26 = vsel %vm496_vm11, %v507_v3, %v486_v13 }
 0xed8   :  { %v527_v27 = vmul.f32 %v515_v17, %v508_v26 }
 0xeda   :  { %528 = vadd.xlane.f32.xlu1 %v527_v27 }
 0xeec   :  { %v525_v29 = vpop.xlane.xlu0 %524 }
 0xeed   :  { %v526_v31 = vsel %vm518_vm12, %v525_v29, %v504_v18  ;;  %v603_v18 = vxor.u32 2147483648, %v602_v16  ;;  %v624_v29 = vld [vmem:[#allocation2 + $0x1f] ss:$0 sm:$0xff] }
 0xeee   :  { %v545_v32 = vmul.f32 %v537_v30, %v526_v31 }
 0xef0   :  { %546 = vadd.xlane.f32.xlu0 %v545_v32  ;;  %v533_v33 = vpop.xlane.xlu0 %532 }
 0xef1   :  { %v534_v35 = vsel %vm518_vm12, %v533_v33, %v512_v21 }
 0xef2   :  { %v553_v37 = vmul.f32 %v537_v30, %v534_v35 }
 0xef4   :  { %554 = vadd.xlane.f32.xlu0 %v553_v37 }
 0xf63   :  { %v521_v38 = vpop.xlane.xlu1 %520 }
 0xf64   :  { %v522_v39 = vsel %vm518_vm12, %v521_v38, %v500_v24 }
 0xf65   :  { %v541_v40 = vmul.f32 %v537_v30, %v522_v39 }
 0xf67   :  { %542 = vadd.xlane.f32.xlu1 %v541_v40  ;;  %v529_v41 = vpop.xlane.xlu1 %528 }
 0xf68   :  { %v530_v42 = vsel %vm518_vm12, %v529_v41, %v508_v26 }
 0xf69   :  { %v549_v44 = vmul.f32 %v537_v30, %v530_v42 }
 0xf6b   :  { %550 = vadd.xlane.f32.xlu1 %v549_v44 }
 0xf7d   :  { %v547_v47 = vpop.xlane.xlu0 %546 }
 0xf7e   :  { %v548_v49 = vsel %vm540_vm13, %v547_v47, %v526_v31  ;;  %v625_v31 = vxor.u32 2147483648, %v624_v29 }
 0xf7f   :  { %v567_v50 = vmul.f32 %v559_v48, %v548_v49 }
 0xf81   :  { %568 = vadd.xlane.f32.xlu0 %v567_v50  ;;  %v555_v51 = vpop.xlane.xlu0 %554 }
 0xf82   :  { %v556_v52 = vsel %vm540_vm13, %v555_v51, %v534_v35 }
 0xf83   :  { %v575_v54 = vmul.f32 %v559_v48, %v556_v52 }
 0xf85   :  { %576 = vadd.xlane.f32.xlu0 %v575_v54 }
 0xff4   :  { %v543_v55 = vpop.xlane.xlu1 %542 }
 0xff5   :  { %v544_v56 = vsel %vm540_vm13, %v543_v55, %v522_v39 }
 0xff6   :  { %v563_v57 = vmul.f32 %v559_v48, %v544_v56 }
 0xff8   :  { %564 = vadd.xlane.f32.xlu1 %v563_v57  ;;  %v551_v58 = vpop.xlane.xlu1 %550 }
 0xff9   :  { %v552_v59 = vsel %vm540_vm13, %v551_v58, %v530_v42 }
 0xffa   :  { %v571_v60 = vmul.f32 %v559_v48, %v552_v59 }
 0xffc   :  { %572 = vadd.xlane.f32.xlu1 %v571_v60 }
0x100e   :  { %v569_v63 = vpop.xlane.xlu0 %568 }
0x100f   :  { %v570_v4 = vsel %vm562_vm14, %v569_v63, %v548_v49 }
0x1010   :  { %v589_v53 = vmul.f32 %v581_v1, %v570_v4 }
0x1012   :  { %590 = vadd.xlane.f32.xlu0 %v589_v53  ;;  %v577_v6 = vpop.xlane.xlu0 %576 }
0x1013   :  { %v578_v8 = vsel %vm562_vm14, %v577_v6, %v556_v52 }
0x1014   :  { %v597_v9 = vmul.f32 %v581_v1, %v578_v8 }
0x1016   :  { %598 = vadd.xlane.f32.xlu0 %v597_v9 }
0x1085   :  { %v565_v10 = vpop.xlane.xlu1 %564 }
0x1086   :  { %v566_v11 = vsel %vm562_vm14, %v565_v10, %v544_v56 }
0x1087   :  { %v585_v12 = vmul.f32 %v581_v1, %v566_v11 }
0x1089   :  { %586 = vadd.xlane.f32.xlu1 %v585_v12  ;;  %v573_v13 = vpop.xlane.xlu1 %572 }
0x108a   :  { %v574_v14 = vsel %vm562_vm14, %v573_v13, %v552_v59 }
0x108b   :  { %v593_v15 = vmul.f32 %v581_v1, %v574_v14 }
0x108d   :  { %594 = vadd.xlane.f32.xlu1 %v593_v15 }
0x109f   :  { %v591_v17 = vpop.xlane.xlu0 %590 }
0x10a0   :  { %v592_v19 = vsel %vm584_vm15, %v591_v17, %v570_v4 }
0x10a1   :  { %v611_v20 = vmul.f32 %v603_v18, %v592_v19 }
0x10a3   :  { %612 = vadd.xlane.f32.xlu0 %v611_v20  ;;  %v599_v21 = vpop.xlane.xlu0 %598 }
0x10a4   :  { %v600_v22 = vsel %vm584_vm15, %v599_v21, %v578_v8 }
0x10a5   :  { %v619_v23 = vmul.f32 %v603_v18, %v600_v22 }
0x10a7   :  { %620 = vadd.xlane.f32.xlu0 %v619_v23 }
0x1116   :  { %v587_v24 = vpop.xlane.xlu1 %586 }
0x1117   :  { %v588_v25 = vsel %vm584_vm15, %v587_v24, %v566_v11 }
0x1118   :  { %v607_v3 = vmul.f32 %v603_v18, %v588_v25 }
0x111a   :  { %608 = vadd.xlane.f32.xlu1 %v607_v3  ;;  %v595_v26 = vpop.xlane.xlu1 %594 }
0x111b   :  { %v596_v27 = vsel %vm584_vm15, %v595_v26, %v574_v14 }
0x111c   :  { %v615_v28 = vmul.f32 %v603_v18, %v596_v27 }
0x111e   :  { %616 = vadd.xlane.f32.xlu1 %v615_v28 }
0x1130   :  { %v613_v30 = vpop.xlane.xlu0 %612 }
0x1131   :  { %v614_v32 = vsel %vm606_vm0, %v613_v30, %v592_v19 }
0x1132   :  { %v633_v33 = vmul.f32 %v625_v31, %v614_v32 }
0x1134   :  { %634 = vadd.xlane.f32.xlu0 %v633_v33  ;;  %v621_v35 = vpop.xlane.xlu0 %620 }
0x1135   :  { %v622_v37 = vsel %vm606_vm0, %v621_v35, %v600_v22 }
0x1136   :  { %v641_v38 = vmul.f32 %v625_v31, %v622_v37 }
0x1138   :  { %642 = vadd.xlane.f32.xlu0 %v641_v38 }
0x11a7   :  { %v609_v39 = vpop.xlane.xlu1 %608 }
0x11a8   :  { %v610_v40 = vsel %vm606_vm0, %v609_v39, %v588_v25 }
0x11a9   :  { %v629_v41 = vmul.f32 %v625_v31, %v610_v40 }
0x11ab   :  { %630 = vadd.xlane.f32.xlu1 %v629_v41  ;;  %v617_v42 = vpop.xlane.xlu1 %616 }
0x11ac   :  { %v618_v44 = vsel %vm606_vm0, %v617_v42, %v596_v27 }
0x11ad   :  { %v637_v46 = vmul.f32 %v625_v31, %v618_v44 }
0x11af   :  { %638 = vadd.xlane.f32.xlu1 %v637_v46 }
0x11c1   :  { %v635_v47 = vpop.xlane.xlu0 %634 }
0x11c2   :  { %v636_v48 = vsel %vm628_vm2, %v635_v47, %v614_v32 }
0x11c3   :  { %v651_v49 = vmul.f32 %v781_v45, %v636_v48 }
0x11c5   :  { %v653_v50 = vsel %vm652_vm3, %v636_v48, %v651_v49  ;;  %v643_v51 = vpop.xlane.xlu0 %642 }
0x11c6   :  { %704 = vst [vmem:[%s885_s1 + $0x8] sm:$0xff] %v653_v50  ;;  %v644_v52 = vsel %vm628_vm2, %v643_v51, %v622_v37 }
0x11c7   :  { %v663_v54 = vmul.f32 %v838_v36, %v644_v52 }
0x11c9   :  { %v665_v55 = vsel %vm664_vm4, %v644_v52, %v663_v54 }
0x11ca   :  { %708 = vst [vmem:[%s885_s1 + $0x18] sm:$0xff] %v665_v55 }
0x1238   :  { %v631_v45 = vpop.xlane.xlu1 %630 }
0x1239   :  { %v632_v43 = vsel %vm628_vm2, %v631_v45, %v610_v40 }
0x123a   :  { %v646_v56 = vmul.f32 %v759_v7, %v632_v43 }
0x123c   :  { %v648_v57 = vsel %vm647_vm5, %v632_v43, %v646_v56  ;;  %v639_v58 = vpop.xlane.xlu1 %638 }
0x123d   :  { %702 = vst [vmem:[%s885_s1] sm:$0xff] %v648_v57  ;;  %v640_v34 = vsel %vm628_vm2, %v639_v58, %v618_v44 }
0x123e   :  { %v657_v36 = vmul.f32 %v806_v0, %v640_v34 }
0x1240   :  { %v659_v59 = vsel %vm658_vm6, %v640_v34, %v657_v36 }
0x1241   :  { %706 = vst [vmem:[%s885_s1 + $0x10] sm:$0xff] %v659_v59 }

// kernel: encoder_forward.1
= control target key start
LH: loop header
LB: loop body
LE: loop exit
PB: predicated region body
PF: predicated region fallthrough
CT: control target
= control target key end

     0   :  { %vm67_vm0 = vcmask 64512   ;;  %vm165_vm1 = vcmask 261120   ;;  %s2050_s19 = smov 96   ;;  %v396_v49 = vlaneseq  ;;  %vm428_vm3 = vcmask 523264   ;;  %s2493_s4 = inlined_call_operand.vmem [shape: f32[8,64], index: 4, kind: input, shape index: {}]   ;;  %s2494_s0 = inlined_call_operand.vmem [shape: f32[32,8], index: 0, kind: input, shape index: {}]   ;;  %s2495_s2 = inlined_call_operand.vmem [shape: f32[32,32], index: 2, kind: input, shape index: {}]   ;;  %s2496_s1 = inlined_call_operand.vmem [shape: f32[32,32], index: 1, kind: input, shape index: {}]   ;;  %s2497_s5 = inlined_call_operand.vmem [shape: f32[64,64], index: 5, kind: input, shape index: {}]   ;;  %s2498_s6 = inlined_call_operand.vmem [shape: f32[3,64], index: 6, kind: input, shape index: {}]   ;;  %s2499_s7 = inlined_call_operand.vmem [shape: f32[32,64], index: 7, kind: input, shape index: {}]   ;;  %s2500_s8 = inlined_call_operand.vmem [shape: f32[32,32], index: 8, kind: input, shape index: {}]   ;;  %s2501_s3 = inlined_call_operand.vmem [shape: f32[2,32], index: 3, kind: input, shape index: {}]   ;;  %s2502_s10 = inlined_call_operand.vmem [shape: f32[3,64], index: 10, kind: input, shape index: {}]   ;;  %s2503_s11 = inlined_call_operand.vmem [shape: f32[32,64], index: 11, kind: input, shape index: {}]   ;;  %s2504_s9 = inlined_call_operand.vmem [shape: f32[32,32], index: 9, kind: input, shape index: {}]   ;;  %s2505_s12 = inlined_call_operand.vmem [shape: f32[32,32], index: 12, kind: input, shape index: {}]   ;;  %s2506_s13 = inlined_call_operand.vmem [shape: f32[32,32], index: 13, kind: input, shape index: {}]   ;;  %s2507_s14 = inlined_call_operand.vmem [shape: f32[3,64], index: 14, kind: input, shape index: {}]   ;;  %s2508_s15 = inlined_call_operand.vmem [shape: f32[64,32], index: 15, kind: output, shape index: {0}]   ;;  %s2509_s16 = inlined_call_operand.vmem [shape: f32[4,32], index: 16, kind: output, shape index: {1}]  }
   0x1   :  { %2510 = sst [smem:[#allocation2_spill]] %s2493_s4  ;;  %v52_v1 = vld [vmem:[%s2494_s0] sm:$0xff]  ;;  %v53_v2 = vld [vmem:[%s2494_s0 + $0x8] sm:$0xff]  ;;  %v54_v3 = vld [vmem:[%s2494_s0 + $0x10] sm:$0xff]  ;;  %s2051_s4 = smov 32   ;;  %vm2053_vm7 = vmmov 0  }
   0x2   :  { %s2511_s23 = sld [smem:[#allocation2_spill]]  ;;  %1741 = vmatprep.mubr.msk.f32.mxu0 %vm67_vm0, %v52_v1  ;;  %v55_v4 = vld [vmem:[%s2494_s0 + $0x18] sm:$0xff]  ;;  %v2158_v7 = vld [vmem:[%s2495_s2] sm:$0xff]  ;;  %v2171_v15 = vld [vmem:[%s2496_s1 + $0x8] sm:$0xff]  ;;  %v2239_v50 = vshrl.u32 %v396_v49, 7  ;;  %vm842_vm12 = vcmask 1041408  }
   0x3   :  { %v56_v14 = vld [vmem:[%s2496_s1] sm:$0xff]  ;;  %v2176_v16 = vld [vmem:[%s2496_s1 + $0x10] sm:$0xff]  ;;  %v2185_v17 = vld [vmem:[%s2496_s1 + $0x18] sm:$0xff]  ;;  %vm1572_vm13 = vcmask 257024  }
   0x4   :  { %1755 = vmatprep.mubr.msk.f32.mxu1 %vm165_vm1, %v56_v14  ;;  %v2192_v26 = vld [vmem:[%s2495_s2 + $0x8] sm:$0xff]  ;;  %v2197_v27 = vld [vmem:[%s2495_s2 + $0x10] sm:$0xff]  ;;  %v2206_v28 = vld [vmem:[%s2495_s2 + $0x18] sm:$0xff]  ;;  %v2242_v51 = vsub.s32 0, %v2239_v50  ;;  %v2250_v53 = vsub.s32 2, %v2239_v50 }
   0x5   :  { %v420_v30 = vld [vmem:[%s2497_s5] sm:$0xff]  ;;  %v421_v31 = vld [vmem:[%s2497_s5 + $0x8] sm:$0xff]  ;;  %v422_v32 = vld [vmem:[%s2497_s5 + $0x10] sm:$0xff] }
   0x6   :  { %v1945_v33 = vpack.c.bf16 %v421_v31, %v420_v30  ;;  %v423_v34 = vld [vmem:[%s2497_s5 + $0x18] sm:$0xff]  ;;  %v424_v37 = vld [vmem:[%s2497_s5 + $0x20] sm:$0xff]  ;;  %v425_v38 = vld [vmem:[%s2497_s5 + $0x28] sm:$0xff] }
   0x7   :  { %v1949_v35 = vpack.c.bf16 %v423_v34, %v422_v32  ;;  %v1953_v39 = vpack.c.bf16 %v425_v38, %v424_v37  ;;  %v426_v42 = vld [vmem:[%s2497_s5 + $0x30] sm:$0xff]  ;;  %v427_v43 = vld [vmem:[%s2497_s5 + $0x38] sm:$0xff]  ;;  %v2247_v52 = vld [vmem:[%s2498_s6] sm:$0x7]  ;;  %v2052_v38 = vmov 0.0|0.0  }
   0x8   :  { %v66_v0 = vld [vmem:[%s2511_s23] sm:$0xff]  ;;  %v1957_v44 = vpack.c.bf16 %v427_v43, %v426_v42  ;;  %v399_v54 = vrot.slane %v2247_v52, %v2242_v51  ;;  %v2256_v56 = vrot.slane %v2247_v52, %v2250_v53 }
   0x9   :  { %1739 = vmatprep.subr.mxu0 %v66_v0 }
   0xa   :  { %1740 = vmatpush3.msra.mxu0 %v66_v0 }
   0xb   :  { %1742 = vmatmul.mubr.msk.f32.vlgmr.msra.gmra.mrb[0].mxu0 %vm67_vm0, %v53_v2 }
   0xc   :  { %1744 = vmatprep.mubr.msk.f32.mxu0 %vm67_vm0, %v54_v3 }
   0xf   :  { %1745 = vmatmul.mubr.msk.f32.gmra.mrb[2].mxu0 %vm67_vm0, %v55_v4 }
  0x10   :  { %1769 = vmatprep.mubr.msk.f32.mxu0 %vm165_vm1, %v2158_v7 }
  0xde   :  { %v1743_v5 = vpop.f32.mrb[0].mxu0 }
  0xdf   :  { %v146_v6 = vpop.f32.mrb[1].mxu0 }
  0xe0   :  { %v2030_v8 = vpack.i.bf16 %v1743_v5, %v146_v6  ;;  %v1929_v9 = vpack.c.bf16 %v1743_v5, %v146_v6 }
  0xe2   :  { %2031 = vrot.lane.b32.xlu0 %v2030_v8, %s2050_s19  ;;  %v1746_v10 = vpop.f32.mrb[2].mxu0  ;;  %1930 = vmatprep.subr.bf16.mxu1 %v1929_v9 }
  0xe3   :  { %v156_v11 = vpop.f32.mrb[3].mxu0  ;;  %1932 = vmatpush3.bf16.msra.mxu1 %v1929_v9 }
  0xe4   :  { %v2035_v12 = vpack.i.bf16 %v1746_v10, %v156_v11  ;;  %v1933_v13 = vpack.c.bf16 %v1746_v10, %v156_v11 }
  0xe6   :  { %2036 = vrot.lane.b32.xlu0 %v2035_v12, %s2050_s19  ;;  %1934 = vmatprep.subr.bf16.mxu1 %v1933_v13 }
  0xe7   :  { %1936 = vmatpush3.bf16.msra.mxu1 %v1933_v13 }
  0xe8   :  { %1946 = vmatprep.subr.bf16.mxu1 %v1945_v33 }
  0xea   :  { %1756 = vmatmul.mubr.msk.f32.vlgmr.msra.gmra.mrb[0].mxu1 %vm165_vm1, %v2171_v15 }
  0xeb   :  { %1758 = vmatprep.mubr.msk.f32.mxu1 %vm165_vm1, %v2176_v16  ;;  %1948 = vmatpush3.bf16.msra.mxu1 %v1945_v33 }
  0xec   :  { %1950 = vmatprep.subr.bf16.mxu1 %v1949_v35 }
  0xee   :  { %1759 = vmatmul.mubr.msk.f32.gmra.mrb[2].mxu1 %vm165_vm1, %v2185_v17 }
  0xef   :  { %1952 = vmatpush3.bf16.msra.mxu1 %v1949_v35  ;;  %v844_v35 = vld [vmem:[%s2499_s7] sm:$0xff] }
  0xf0   :  { %1954 = vmatprep.subr.bf16.mxu1 %v1953_v39 }
  0xf3   :  { %1956 = vmatpush3.bf16.msra.mxu1 %v1953_v39 }
  0xf4   :  { %1958 = vmatprep.subr.bf16.mxu1 %v1957_v44 }
  0xf7   :  { %1960 = vmatpush3.bf16.msra.mxu1 %v1957_v44  ;;  %v2306_v44 = vsub.s32 1, %v2239_v50 }
  0xf8   :  { %1977 = vmatprep.subr.bf16.mxu1 %v2052_v38 }
 0x154   :  { %v2032_v18 = vpop.permute.xlu0 %2031 }
 0x155   :  { %v2034_v19 = vunpack.i.h.bf16 %v2032_v18  ;;  %v2033_v20 = vunpack.i.l.bf16 %v2032_v18 }
 0x157   :  { %v1937_v21 = vpack.c.bf16 %v2034_v19, %v2033_v20 }
 0x158   :  { %v2037_v22 = vpop.permute.xlu0 %2036 }
 0x159   :  { %v2039_v23 = vunpack.i.h.bf16 %v2037_v22  ;;  %v2038_v24 = vunpack.i.l.bf16 %v2037_v22  ;;  %1938 = vmatprep.subr.bf16.mxu0 %v1937_v21 }
 0x15a   :  { %1940 = vmatpush3.bf16.msra.mxu0 %v1937_v21 }
 0x15b   :  { %v1941_v25 = vpack.c.bf16 %v2039_v23, %v2038_v24 }
 0x15d   :  { %1942 = vmatprep.subr.bf16.mxu0 %v1941_v25 }
 0x15e   :  { %1944 = vmatpush3.bf16.msra.mxu0 %v1941_v25 }
 0x161   :  { %1770 = vmatmul.mubr.msk.f32.vlgmr.msra.gmra.mrb[4].mxu0 %vm165_vm1, %v2192_v26 }
 0x162   :  { %1772 = vmatprep.mubr.msk.f32.mxu0 %vm165_vm1, %v2197_v27 }
 0x165   :  { %1773 = vmatmul.mubr.msk.f32.gmra.mrb[6].mxu0 %vm165_vm1, %v2206_v28 }
 0x166   :  { %1805 = vmatprep.mubr.msk.f32.mxu0 %vm165_vm1, %v56_v14 }
 0x1bd   :  { %v1757_v29 = vpop.f32.mrb[0].mxu1 }
 0x1be   :  { %v244_v36 = vpop.f32.mrb[1].mxu1 }
 0x1c1   :  { %v1760_v40 = vpop.f32.mrb[2].mxu1 }
 0x1c2   :  { %v254_v41 = vpop.f32.mrb[3].mxu1 }
 0x234   :  { %v1771_v45 = vpop.f32.mrb[4].mxu0 }
 0x235   :  { %v357_v46 = vpop.f32.mrb[5].mxu0 }
 0x236   :  { %380 = vrot.lane.b32.xlu1 %v357_v46, %s2051_s4 }
 0x238   :  { %v1774_v47 = vpop.f32.mrb[6].mxu0 }
 0x239   :  { %v367_v48 = vpop.f32.mrb[7].mxu0 }
 0x23a   :  { %382 = vrot.lane.b32.xlu1 %v1771_v45, %s2051_s4  ;;  %384 = vrot.lane.b32.xlu0 %v367_v48, %s2051_s4  ;;  %v735_v45 = vrot.slane %v2247_v52, %v2306_v44 }
 0x23e   :  { %386 = vrot.lane.b32.xlu1 %v1774_v47, %s2051_s4 }
 0x2a8   :  { %v381_v55 = vpop.permute.xlu1 %380 }
 0x2a9   :  { %v392_v57 = vsel %vm165_vm1, %v244_v36, %v381_v55  ;;  %v845_v36 = vld [vmem:[%s2499_s7 + $0x8] sm:$0xff] }
 0x2aa   :  { %v400_v58 = vadd.f32 %v399_v54, %v392_v57  ;;  %v1983_v37 = vpack.c.bf16 %v845_v36, %v844_v35  ;;  %v1323_v35 = vld [vmem:[%s2503_s11 + $0x18] sm:$0xff] }
 0x2ac   :  { %v412_v59 = vmul.f32 %v2256_v56, %v400_v58  ;;  %v383_v60 = vpop.permute.xlu1 %382  ;;  %v385_v61 = vpop.permute.xlu0 %384  ;;  %vm404_vm2 = vcmp.gt.f32.partialorder %v400_v58, 0.0 }
 0x2ad   :  { %v393_v62 = vsel %vm165_vm1, %v1757_v29, %v383_v60  ;;  %v394_v63 = vsel %vm165_vm1, %v254_v41, %v385_v61  ;;  %v2054_v41 = vmov 0.0  }
 0x2ae   :  { %v401_v0 = vadd.f32 %v399_v54, %v393_v62  ;;  %v402_v1 = vadd.f32 %v399_v54, %v394_v63  ;;  %v416_v2 = vsel %vm404_vm2, %v400_v58, %v412_v59 }
 0x2af   :  { %1791 = vmatprep.mubr.msk.f32.mxu1 %vm428_vm3, %v416_v2 }
 0x2b0   :  { %vm405_vm4 = vcmp.gt.f32.partialorder %v401_v0, 0.0  ;;  %v413_v3 = vmul.f32 %v2256_v56, %v401_v0  ;;  %v414_v4 = vmul.f32 %v2256_v56, %v402_v1  ;;  %v387_v5 = vpop.permute.xlu1 %386  ;;  %vm406_vm5 = vcmp.gt.f32.partialorder %v402_v1, 0.0 }
 0x2b1   :  { %v395_v6 = vsel %vm165_vm1, %v1760_v40, %v387_v5 }
 0x2b2   :  { %v417_v8 = vsel %vm405_vm4, %v401_v0, %v413_v3  ;;  %v403_v9 = vadd.f32 %v399_v54, %v395_v6  ;;  %v418_v10 = vsel %vm406_vm5, %v402_v1, %v414_v4  ;;  %v848_v3 = vld [vmem:[%s2500_s8] sm:$0xff]  ;;  %v849_v4 = vld [vmem:[%s2500_s8 + $0x8] sm:$0xff] }
 0x2b3   :  { %1792 = vmatmul.mubr.msk.f32.vlgmr.msra.gmra.mrb[4].mxu1 %vm428_vm3, %v417_v8 }
 0x2b4   :  { %v415_v11 = vmul.f32 %v2256_v56, %v403_v9  ;;  %1794 = vmatprep.mubr.msk.f32.mxu1 %vm428_vm3, %v418_v10  ;;  %vm407_vm6 = vcmp.gt.f32.partialorder %v403_v9, 0.0 }
 0x2b6   :  { %v419_v12 = vsel %vm407_vm6, %v403_v9, %v415_v11  ;;  %v1991_v9 = vpack.c.bf16 %v849_v4, %v848_v3  ;;  %v850_v11 = vld [vmem:[%s2500_s8 + $0x10] sm:$0xff]  ;;  %v1325_v3 = vld [vmem:[%s2505_s12 + $0x8] sm:$0xff] }
 0x2b7   :  { %1795 = vmatmul.mubr.msk.f32.gmra.mrb[6].mxu1 %vm428_vm3, %v419_v12  ;;  %v851_v12 = vld [vmem:[%s2500_s8 + $0x18] sm:$0xff] }
 0x2b8   :  { %1833 = vmatprep.mubr.msk.f32.mxu1 %vm2053_vm7, %v2054_v41 }
 0x386   :  { %v1793_v13 = vpop.f32.mrb[4].mxu1 }
 0x387   :  { %v507_v14 = vpop.f32.mrb[5].mxu1 }
 0x388   :  { %v2040_v18 = vpack.i.bf16 %v1793_v13, %v507_v14  ;;  %v1961_v19 = vpack.c.bf16 %v1793_v13, %v507_v14  ;;  %v1995_v13 = vpack.c.bf16 %v851_v12, %v850_v11 }
 0x38a   :  { %2041 = vrot.lane.b32.xlu0 %v2040_v18, %s2050_s19  ;;  %v1796_v20 = vpop.f32.mrb[6].mxu1  ;;  %1962 = vmatprep.subr.bf16.mxu0 %v1961_v19 }
 0x38b   :  { %v517_v21 = vpop.f32.mrb[7].mxu1  ;;  %1964 = vmatpush3.bf16.msra.mxu0 %v1961_v19 }
 0x38c   :  { %v2045_v22 = vpack.i.bf16 %v1796_v20, %v517_v21  ;;  %v1965_v23 = vpack.c.bf16 %v1796_v20, %v517_v21  ;;  %v2351_v21 = vld [vmem:[%s2502_s10] sm:$0x7] }
 0x38e   :  { %2046 = vrot.lane.b32.xlu1 %v2045_v22, %s2050_s19  ;;  %1966 = vmatprep.subr.bf16.mxu0 %v1965_v23  ;;  %v860_v22 = vrot.slane %v2351_v21, %v2242_v51 }
 0x38f   :  { %1968 = vmatpush3.bf16.msra.mxu0 %v1965_v23 }
 0x392   :  { %1806 = vmatmul.mubr.msk.f32.vlgmr.msra.gmra.mrb[8].mxu0 %vm165_vm1, %v2171_v15 }
 0x393   :  { %1808 = vmatprep.mubr.msk.f32.mxu0 %vm165_vm1, %v2176_v16 }
 0x396   :  { %1809 = vmatmul.mubr.msk.f32.gmra.mrb[10].mxu0 %vm165_vm1, %v2185_v17 }
 0x397   :  { %1819 = vmatprep.mubr.msk.f32.mxu0 %vm165_vm1, %v2158_v7 }
 0x3fc   :  { %v2042_v24 = vpop.permute.xlu0 %2041 }
 0x3fd   :  { %v2044_v25 = vunpack.i.h.bf16 %v2042_v24  ;;  %v2043_v29 = vunpack.i.l.bf16 %v2042_v24 }
 0x3ff   :  { %v1969_v30 = vpack.c.bf16 %v2044_v25, %v2043_v29  ;;  %v1320_v29 = vld [vmem:[%s2503_s11] sm:$0xff] }
 0x400   :  { %v2047_v31 = vpop.permute.xlu1 %2046 }
 0x401   :  { %v2049_v32 = vunpack.i.h.bf16 %v2047_v31  ;;  %v2048_v33 = vunpack.i.l.bf16 %v2047_v31  ;;  %1970 = vmatprep.subr.bf16.mxu0 %v1969_v30 }
 0x402   :  { %1972 = vmatpush3.bf16.msra.mxu0 %v1969_v30  ;;  %v1321_v30 = vld [vmem:[%s2503_s11 + $0x8] sm:$0xff] }
 0x403   :  { %v1973_v34 = vpack.c.bf16 %v2049_v32, %v2048_v33 }
 0x405   :  { %1974 = vmatprep.subr.bf16.mxu0 %v1973_v34 }
 0x406   :  { %1976 = vmatpush3.bf16.msra.mxu0 %v1973_v34  ;;  %v2008_v34 = vpack.c.bf16 %v1321_v30, %v1320_v29  ;;  %v1329_v29 = vld [vmem:[%s2506_s13 + $0x8] sm:$0xff] }
 0x407   :  { %1984 = vmatprep.subr.bf16.mxu0 %v1983_v37 }
 0x409   :  { %1820 = vmatmul.mubr.msk.f32.vlgmr.msra.gmra.mrb[12].mxu0 %vm165_vm1, %v2192_v26  ;;  %v846_v26 = vld [vmem:[%s2499_s7 + $0x10] sm:$0xff] }
 0x40a   :  { %1822 = vmatprep.mubr.msk.f32.mxu0 %vm165_vm1, %v2197_v27  ;;  %1986 = vmatpush3.bf16.msra.mxu0 %v1983_v37  ;;  %v847_v27 = vld [vmem:[%s2499_s7 + $0x18] sm:$0xff]  ;;  %v852_v37 = vld [vmem:[%s2504_s9] sm:$0xff] }
 0x40d   :  { %1823 = vmatmul.mubr.msk.f32.gmra.mrb[14].mxu0 %vm165_vm1, %v2206_v28  ;;  %v1987_v28 = vpack.c.bf16 %v847_v27, %v846_v26  ;;  %v853_v26 = vld [vmem:[%s2504_s9 + $0x8] sm:$0xff] }
 0x40e   :  { %v1999_v27 = vpack.c.bf16 %v853_v26, %v852_v37 }
 0x40f   :  { %1988 = vmatprep.subr.bf16.mxu0 %v1987_v28 }
 0x410   :  { %1990 = vmatpush3.bf16.msra.mxu0 %v1987_v28 }
 0x411   :  { %2000 = vmatprep.subr.bf16.mxu0 %v1999_v27 }
 0x465   :  { %v1807_v7 = vpop.f32.mrb[8].mxu0 }
 0x466   :  { %v592_v15 = vpop.f32.mrb[9].mxu0 }
 0x469   :  { %v1810_v16 = vpop.f32.mrb[10].mxu0 }
 0x46a   :  { %v602_v17 = vpop.f32.mrb[11].mxu0 }
 0x4dc   :  { %v1821_v39 = vpop.f32.mrb[12].mxu0 }
 0x4dd   :  { %718 = vrot.lane.b32.xlu1 %v1821_v39, %s2051_s4  ;;  %v693_v40 = vpop.f32.mrb[13].mxu0 }
 0x4de   :  { %716 = vrot.lane.b32.xlu0 %v693_v40, %s2051_s4 }
 0x4e0   :  { %v1824_v42 = vpop.f32.mrb[14].mxu0 }
 0x4e1   :  { %722 = vrot.lane.b32.xlu1 %v1824_v42, %s2051_s4  ;;  %v703_v43 = vpop.f32.mrb[15].mxu0 }
 0x4e2   :  { %720 = vrot.lane.b32.xlu0 %v703_v43, %s2051_s4 }
 0x54f   :  { %v719_v46 = vpop.permute.xlu1 %718 }
 0x550   :  { %v729_v47 = vsel %vm165_vm1, %v1807_v7, %v719_v46  ;;  %v717_v48 = vpop.permute.xlu0 %716  ;;  %v854_v46 = vld [vmem:[%s2504_s9 + $0x10] sm:$0xff] }
 0x551   :  { %v737_v49 = vadd.f32 %v735_v45, %v729_v47  ;;  %v728_v54 = vsel %vm165_vm1, %v592_v15, %v717_v48  ;;  %v855_v47 = vld [vmem:[%s2504_s9 + $0x18] sm:$0xff] }
 0x552   :  { %v736_v55 = vadd.f32 %v735_v45, %v728_v54  ;;  %v2003_v48 = vpack.c.bf16 %v855_v47, %v854_v46  ;;  %v1134_v46 = vrot.slane %v2351_v21, %v2250_v53 }
 0x553   :  { %v723_v57 = vpop.permute.xlu1 %722  ;;  %vm741_vm8 = vcmp.gt.f32.partialorder %v737_v49, 0.0  ;;  %v745_v58 = vmul.f32 %v737_v49, %v2256_v56 }
 0x554   :  { %v744_v59 = vmul.f32 %v736_v55, %v2256_v56  ;;  %v731_v50 = vsel %vm165_vm1, %v1810_v16, %v723_v57  ;;  %v721_v60 = vpop.permute.xlu0 %720  ;;  %vm740_vm9 = vcmp.gt.f32.partialorder %v736_v55, 0.0 }
 0x555   :  { %v739_v61 = vadd.f32 %v735_v45, %v731_v50  ;;  %v730_v52 = vsel %vm165_vm1, %v602_v17, %v721_v60  ;;  %v749_v62 = vsel %vm741_vm8, %v737_v49, %v745_v58  ;;  %v1322_v17 = vld [vmem:[%s2503_s11 + $0x10] sm:$0xff] }
 0x556   :  { %v738_v63 = vadd.f32 %v735_v45, %v730_v52  ;;  %831 = vrot.lane.b32.xlu1 %v749_v62, %s2050_s19  ;;  %v748_v0 = vsel %vm740_vm9, %v736_v55, %v744_v59  ;;  %v2011_v40 = vpack.c.bf16 %v1323_v35, %v1322_v17 }
 0x557   :  { %v1978_v1 = vpack.c.bf16 %v749_v62, %v748_v0  ;;  %1844 = vmatprep.mubr.msk.f32.mxu0 %vm165_vm1, %v748_v0  ;;  %829 = vrot.lane.b32.xlu0 %v748_v0, %s2050_s19  ;;  %vm743_vm10 = vcmp.gt.f32.partialorder %v739_v61, 0.0  ;;  %v747_v2 = vmul.f32 %v739_v61, %v2256_v56 }
 0x558   :  { %1845 = vmatmul.mubr.msk.f32.vlgmr.msra.gmra.mrb[16].mxu0 %vm165_vm1, %v749_v62  ;;  %vm742_vm11 = vcmp.gt.f32.partialorder %v738_v63, 0.0  ;;  %v746_v5 = vmul.f32 %v738_v63, %v2256_v56  ;;  %v64_v56 = vld [vmem:[%s2501_s3] sm:$0x3] }
 0x559   :  { %1979 = vmatpush3.bf16.msra.mxu1 %v1978_v1  ;;  %v751_v6 = vsel %vm743_vm10, %v739_v61, %v747_v2  ;;  %2002 = vmatpush3.bf16.msra.mxu0 %v1999_v27  ;;  %v1324_v2 = vld [vmem:[%s2505_s12] sm:$0xff] }
 0x55a   :  { %835 = vrot.lane.b32.xlu1 %v751_v6, %s2050_s19  ;;  %v750_v8 = vsel %vm742_vm11, %v738_v63, %v746_v5  ;;  %1980 = vmatprep.subr.bf16.mxu1 %v2052_v38  ;;  %v2014_v4 = vpack.c.bf16 %v1325_v3, %v1324_v2  ;;  %v1326_v5 = vld [vmem:[%s2505_s12 + $0x10] sm:$0xff] }
 0x55b   :  { %833 = vrot.lane.b32.xlu0 %v750_v8, %s2050_s19  ;;  %v1981_v10 = vpack.c.bf16 %v751_v6, %v750_v8  ;;  %1847 = vmatprep.mubr.msk.f32.mxu0 %vm165_vm1, %v750_v8 }
 0x55c   :  { %1848 = vmatmul.mubr.msk.f32.gmra.mrb[18].mxu0 %vm165_vm1, %v751_v6  ;;  %2004 = vmatprep.subr.bf16.mxu0 %v2003_v48  ;;  %v1327_v6 = vld [vmem:[%s2505_s12 + $0x18] sm:$0xff] }
 0x55d   :  { %1982 = vmatpush3.bf16.msra.mxu1 %v1981_v10  ;;  %2006 = vmatpush3.bf16.msra.mxu0 %v2003_v48  ;;  %v2017_v8 = vpack.c.bf16 %v1327_v6, %v1326_v5 }
 0x55e   :  { %1992 = vmatprep.subr.bf16.mxu1 %v1991_v9  ;;  %2019 = vmatprep.subr.bf16.mxu0 %v2052_v38 }
 0x560   :  { %1834 = vmatmul.mubr.msk.f32.vlgmr.msra.gmra.mrb[8].mxu1 %vm165_vm1, %v64_v56 }
 0x561   :  { %1994 = vmatpush3.bf16.msra.mxu1 %v1991_v9  ;;  %v993_v9 = vrot.slane %v2351_v21, %v2306_v44 }
 0x562   :  { %1996 = vmatprep.subr.bf16.mxu1 %v1995_v13 }
 0x565   :  { %1998 = vmatpush3.bf16.msra.mxu1 %v1995_v13 }
 0x566   :  { %2007 = vmatprep.subr.bf16.mxu1 %v2052_v38 }
 0x5c8   :  { %v832_v14 = vpop.permute.xlu1 %831 }
 0x5c9   :  { %v830_v18 = vpop.permute.xlu0 %829 }
 0x5ca   :  { %1850 = vmatprep.mubr.msk.f32.mxu0 %vm165_vm1, %v830_v18 }
 0x5cb   :  { %1851 = vmatmul.mubr.msk.f32.gmra.mrb[20].mxu0 %vm165_vm1, %v832_v14 }
 0x5cc   :  { %v836_v20 = vpop.permute.xlu1 %835 }
 0x5cd   :  { %v834_v19 = vpop.permute.xlu0 %833 }
 0x5ce   :  { %1853 = vmatprep.mubr.msk.f32.mxu0 %vm165_vm1, %v834_v19 }
 0x5cf   :  { %1854 = vmatmul.mubr.msk.f32.gmra.mrb[22].mxu0 %vm165_vm1, %v836_v20 }
 0x62b   :  { %v1846_v23 = vpop.f32.mrb[16].mxu0 }
 0x62c   :  { %v949_v24 = vadd.f32 %v1846_v23, %v860_v22  ;;  %v943_v25 = vpop.f32.mrb[17].mxu0 }
 0x62d   :  { %v944_v31 = vadd.f32 %v943_v25, %v860_v22  ;;  %v1328_v25 = vld [vmem:[%s2506_s13] sm:$0xff] }
 0x62e   :  { %v983_v7 = vmax.f32 %v949_v24, 0.0  ;;  %v2020_v30 = vpack.c.bf16 %v1329_v29, %v1328_v25 }
 0x62f   :  { %v982_v32 = vmax.f32 %v944_v31, 0.0  ;;  %v1849_v33 = vpop.f32.mrb[18].mxu0  ;;  %1280 = vrot.lane.b32.xlu1 %v944_v31, %s2050_s19 }
 0x630   :  { %v959_v15 = vadd.f32 %v1849_v33, %v860_v22  ;;  %v953_v16 = vpop.f32.mrb[19].mxu0 }
 0x631   :  { %v954_v36 = vadd.f32 %v953_v16, %v860_v22  ;;  %1864 = vmatprep.mubr.msk.f32.mxu1 %vm165_vm1, %v982_v32 }
 0x632   :  { %1865 = vmatmul.mubr.msk.f32.vlgmr.msra.gmra.mrb[10].mxu1 %vm165_vm1, %v983_v7  ;;  %v985_v42 = vmax.f32 %v959_v15, 0.0  ;;  %v2432_v7 = vld [vmem:[%s2507_s14] sm:$0x7] }
 0x633   :  { %v984_v28 = vmax.f32 %v954_v36, 0.0  ;;  %v821_v39 = vpop.f32.mrb[8].mxu1  ;;  %1284 = vrot.lane.b32.xlu1 %v954_v36, %s2050_s19  ;;  %2009 = vmatpush3.bf16.msra.mxu1 %v2008_v34  ;;  %v1336_v37 = vrot.slane %v2432_v7, %v2242_v51  ;;  %v1330_v51 = vld [vmem:[%s2506_s13 + $0x10] sm:$0xff] }
 0x634   :  { %v838_v43 = vrot.slane %v821_v39, 6  ;;  %v1835_v45 = vpop.f32.mrb[9].mxu1  ;;  %2010 = vmatprep.subr.bf16.mxu1 %v2052_v38 }
 0x635   :  { %1867 = vmatprep.mubr.msk.f32.mxu1 %vm165_vm1, %v984_v28 }
 0x636   :  { %839 = vrot.lane.b32.xlu0 %v838_v43, %s2050_s19  ;;  %1868 = vmatmul.mubr.msk.f32.gmra.mrb[12].mxu1 %vm165_vm1, %v985_v42  ;;  %v1331_v43 = vld [vmem:[%s2506_s13 + $0x18] sm:$0xff] }
 0x637   :  { %2012 = vmatpush3.bf16.msra.mxu1 %v2011_v40  ;;  %v2023_v45 = vpack.c.bf16 %v1331_v43, %v1330_v51 }
 0x638   :  { %2013 = vmatprep.subr.bf16.mxu1 %v2052_v38 }
 0x63a   :  { %1282 = vrot.lane.b32.xlu0 %v949_v24, %s2050_s19 }
 0x63e   :  { %1286 = vrot.lane.b32.xlu0 %v959_v15, %s2050_s19 }
 0x69e   :  { %v1852_v49 = vpop.f32.mrb[20].mxu0 }
 0x69f   :  { %v969_v54 = vadd.f32 %v1852_v49, %v860_v22  ;;  %v963_v55 = vpop.f32.mrb[21].mxu0 }
 0x6a0   :  { %v964_v57 = vadd.f32 %v963_v55, %v860_v22 }
 0x6a1   :  { %1290 = vrot.lane.b32.xlu0 %v969_v54, %s2050_s19  ;;  %v987_v50 = vmax.f32 %v969_v54, 0.0  ;;  %v1281_v55 = vpop.permute.xlu1 %1280 }
 0x6a2   :  { %v986_v58 = vmax.f32 %v964_v57, 0.0  ;;  %v1855_v59 = vpop.f32.mrb[22].mxu0  ;;  %1288 = vrot.lane.b32.xlu1 %v964_v57, %s2050_s19 }
 0x6a3   :  { %v979_v60 = vadd.f32 %v1855_v59, %v860_v22  ;;  %v973_v61 = vpop.f32.mrb[23].mxu0 }
 0x6a4   :  { %v974_v52 = vadd.f32 %v973_v61, %v860_v22  ;;  %1870 = vmatprep.mubr.msk.f32.mxu1 %vm165_vm1, %v986_v58 }
 0x6a5   :  { %1294 = vrot.lane.b32.xlu0 %v979_v60, %s2050_s19  ;;  %1871 = vmatmul.mubr.msk.f32.gmra.mrb[14].mxu1 %vm165_vm1, %v987_v50  ;;  %v989_v63 = vmax.f32 %v979_v60, 0.0 }
 0x6a6   :  { %v988_v62 = vmax.f32 %v974_v52, 0.0  ;;  %1292 = vrot.lane.b32.xlu1 %v974_v52, %s2050_s19 }
 0x6a8   :  { %1873 = vmatprep.mubr.msk.f32.mxu1 %vm165_vm1, %v988_v62  ;;  %v840_v0 = vpop.permute.xlu0 %839 }
 0x6a9   :  { %1874 = vmatmul.mubr.msk.f32.gmra.mrb[16].mxu1 %vm165_vm1, %v989_v63  ;;  %v843_v1 = vsel %vm842_vm12, %v821_v39, %v840_v0 }
 0x6aa   :  { %1904 = vmatprep.mubr.msk.f32.mxu1 %vm2053_vm7, %v2054_v41 }
 0x6ac   :  { %v1283_v54 = vpop.permute.xlu0 %1282 }
 0x6ad   :  { %1905 = vmatmul.mubr.msk.f32.vlgmr.msra.gmra.mrb[18].mxu1 %vm165_vm1, %v843_v1  ;;  %v1285_v1 = vpop.permute.xlu1 %1284 }
 0x6ae   :  { %1915 = vmatprep.mubr.msk.f32.mxu1 %vm2053_vm7, %v2054_v41  ;;  %2015 = vmatpush3.bf16.msra.mxu1 %v2014_v4 }
 0x6af   :  { %2016 = vmatprep.subr.bf16.mxu1 %v2052_v38 }
 0x6b0   :  { %v1287_v63 = vpop.permute.xlu0 %1286 }
 0x6b2   :  { %2018 = vmatpush3.bf16.msra.mxu1 %v2017_v8 }
 0x705   :  { %v1866_v10 = vpop.f32.mrb[10].mxu1 }
 0x706   :  { %v1090_v56 = vadd.f32 %v1866_v10, %v993_v9  ;;  %v1084_v11 = vpop.f32.mrb[11].mxu1 }
 0x707   :  { %v1085_v12 = vadd.f32 %v1084_v11, %v993_v9  ;;  %v1414_v11 = vrot.slane %v2432_v7, %v2306_v44 }
 0x708   :  { %v1124_v18 = vmax.f32 %v1090_v56, 0.0 }
 0x709   :  { %v1123_v13 = vmax.f32 %v1085_v12, 0.0  ;;  %v1869_v14 = vpop.f32.mrb[12].mxu1 }
 0x70a   :  { %v1100_v19 = vadd.f32 %v1869_v14, %v993_v9  ;;  %v1094_v20 = vpop.f32.mrb[13].mxu1 }
 0x70b   :  { %v1095_v22 = vadd.f32 %v1094_v20, %v993_v9  ;;  %1884 = vmatprep.mubr.msk.f32.mxu0 %vm165_vm1, %v1123_v13 }
 0x70c   :  { %1885 = vmatmul.mubr.msk.f32.vlgmr.msra.gmra.mrb[24].mxu0 %vm165_vm1, %v1124_v18  ;;  %v1126_v24 = vmax.f32 %v1100_v19, 0.0 }
 0x70d   :  { %v1125_v23 = vmax.f32 %v1095_v22, 0.0  ;;  %2021 = vmatpush3.bf16.msra.mxu0 %v2020_v30 }
 0x70e   :  { %2022 = vmatprep.subr.bf16.mxu0 %v2052_v38 }
 0x70f   :  { %1887 = vmatprep.mubr.msk.f32.mxu0 %vm165_vm1, %v1125_v23 }
 0x710   :  { %1888 = vmatmul.mubr.msk.f32.gmra.mrb[26].mxu0 %vm165_vm1, %v1126_v24 }
 0x711   :  { %2024 = vmatpush3.bf16.msra.mxu0 %v2023_v45 }
 0x713   :  { %v1291_v8 = vpop.permute.xlu0 %1290 }
 0x714   :  { %v1289_v10 = vpop.permute.xlu1 %1288 }
 0x717   :  { %v1295_v30 = vpop.permute.xlu0 %1294 }
 0x778   :  { %v1872_v31 = vpop.f32.mrb[14].mxu1 }
 0x779   :  { %v1110_v32 = vadd.f32 %v1872_v31, %v993_v9  ;;  %v1104_v33 = vpop.f32.mrb[15].mxu1  ;;  %v1293_v31 = vpop.permute.xlu1 %1292 }
 0x77a   :  { %v1105_v34 = vadd.f32 %v1104_v33, %v993_v9 }
 0x77b   :  { %v1128_v17 = vmax.f32 %v1110_v32, 0.0 }
 0x77c   :  { %v1127_v15 = vmax.f32 %v1105_v34, 0.0  ;;  %v1875_v16 = vpop.f32.mrb[16].mxu1 }
 0x77d   :  { %v1120_v35 = vadd.f32 %v1875_v16, %v993_v9  ;;  %v1114_v36 = vpop.f32.mrb[17].mxu1 }
 0x77e   :  { %v1115_v26 = vadd.f32 %v1114_v36, %v993_v9  ;;  %1890 = vmatprep.mubr.msk.f32.mxu0 %vm165_vm1, %v1127_v15  ;;  %v1492_v15 = vrot.slane %v2432_v7, %v2250_v53 }
 0x77f   :  { %1891 = vmatmul.mubr.msk.f32.gmra.mrb[28].mxu0 %vm165_vm1, %v1128_v17  ;;  %v1130_v39 = vmax.f32 %v1120_v35, 0.0 }
 0x780   :  { %v1129_v27 = vmax.f32 %v1115_v26, 0.0  ;;  %v1406_v28 = vpop.f32.mrb[18].mxu1 }
 0x781   :  { %v1407_v40 = vadd.f32 %v1406_v28, %v1336_v37  ;;  %v1906_v42 = vpop.f32.mrb[19].mxu1 }
 0x782   :  { %1893 = vmatprep.mubr.msk.f32.mxu0 %vm165_vm1, %v1129_v27 }
 0x783   :  { %v1410_v38 = vmax.f32 %v1407_v40, 0.0  ;;  %1568 = vrot.lane.b32.xlu1 %v1407_v40, %s2050_s19  ;;  %1894 = vmatmul.mubr.msk.f32.gmra.mrb[30].mxu0 %vm165_vm1, %v1130_v39 }
 0x784   :  { %1926 = vmatprep.mubr.msk.f32.mxu0 %vm2053_vm7, %v2054_v41 }
 0x785   :  { %1916 = vmatmul.mubr.msk.f32.vlgmr.msra.gmra.mrb[20].mxu1 %vm165_vm1, %v1410_v38 }
 0x7df   :  { %v1886_v47 = vpop.f32.mrb[24].mxu0 }
 0x7e0   :  { %v1231_v48 = vadd.f32 %v1886_v47, %v1134_v46  ;;  %v1225_v49 = vpop.f32.mrb[25].mxu0 }
 0x7e1   :  { %v1226_v41 = vadd.f32 %v1225_v49, %v1134_v46 }
 0x7e2   :  { %v1265_v57 = vmax.f32 %v1231_v48, 0.0 }
 0x7e3   :  { %v1264_v58 = vmax.f32 %v1226_v41, 0.0  ;;  %v1889_v59 = vpop.f32.mrb[26].mxu0 }
 0x7e4   :  { %v1305_v50 = vadd.f32 %v1283_v54, %v1265_v57  ;;  %v1241_v60 = vadd.f32 %v1889_v59, %v1134_v46  ;;  %v1235_v61 = vpop.f32.mrb[27].mxu0 }
 0x7e5   :  { %v1304_v52 = vadd.f32 %v1281_v55, %v1264_v58  ;;  %v1236_v62 = vadd.f32 %v1235_v61, %v1134_v46 }
 0x7e6   :  { %1313 = vst.msk [vmem:[%s2508_s15 + $0x8] sm:$0xff] %vm165_vm1, %v1305_v50  ;;  %v1267_v21 = vmax.f32 %v1241_v60, 0.0 }
 0x7e7   :  { %1312 = vst.msk [vmem:[%s2508_s15] sm:$0xff] %vm165_vm1, %v1304_v52  ;;  %v1266_v0 = vmax.f32 %v1236_v62, 0.0 }
 0x7e8   :  { %v1307_v2 = vadd.f32 %v1287_v63, %v1267_v21 }
 0x7e9   :  { %v1306_v3 = vadd.f32 %v1285_v1, %v1266_v0 }
 0x7ea   :  { %1315 = vst.msk [vmem:[%s2508_s15 + $0x18] sm:$0xff] %vm165_vm1, %v1307_v2 }
 0x7eb   :  { %1314 = vst.msk [vmem:[%s2508_s15 + $0x10] sm:$0xff] %vm165_vm1, %v1306_v3 }
 0x7f5   :  { %v1569_v37 = vpop.permute.xlu1 %1568 }
 0x852   :  { %v1892_v4 = vpop.f32.mrb[28].mxu0 }
 0x853   :  { %v1251_v5 = vadd.f32 %v1892_v4, %v1134_v46  ;;  %v1245_v6 = vpop.f32.mrb[29].mxu0 }
 0x854   :  { %v1246_v9 = vadd.f32 %v1245_v6, %v1134_v46 }
 0x855   :  { %v1269_v56 = vmax.f32 %v1251_v5, 0.0 }
 0x856   :  { %v1268_v12 = vmax.f32 %v1246_v9, 0.0  ;;  %v1895_v13 = vpop.f32.mrb[30].mxu0 }
 0x857   :  { %v1309_v14 = vadd.f32 %v1291_v8, %v1269_v56  ;;  %v1261_v18 = vadd.f32 %v1895_v13, %v1134_v46  ;;  %v1255_v19 = vpop.f32.mrb[31].mxu0 }
 0x858   :  { %v1308_v20 = vadd.f32 %v1289_v10, %v1268_v12  ;;  %v1256_v22 = vadd.f32 %v1255_v19, %v1134_v46  ;;  %v1484_v23 = vpop.f32.mrb[20].mxu1 }
 0x859   :  { %1317 = vst.msk [vmem:[%s2508_s15 + $0x28] sm:$0xff] %vm165_vm1, %v1309_v14  ;;  %v1271_v24 = vmax.f32 %v1261_v18, 0.0  ;;  %v1485_v25 = vadd.f32 %v1484_v23, %v1414_v11  ;;  %v1917_v29 = vpop.f32.mrb[21].mxu1 }
 0x85a   :  { %1316 = vst.msk [vmem:[%s2508_s15 + $0x20] sm:$0xff] %vm165_vm1, %v1308_v20  ;;  %v1270_v44 = vmax.f32 %v1256_v22, 0.0 }
 0x85b   :  { %v1311_v32 = vadd.f32 %v1295_v30, %v1271_v24  ;;  %v1488_v33 = vmax.f32 %v1485_v25, 0.0 }
 0x85c   :  { %v1310_v34 = vadd.f32 %v1293_v31, %v1270_v44 }
 0x85d   :  { %1319 = vst.msk [vmem:[%s2508_s15 + $0x38] sm:$0xff] %vm165_vm1, %v1311_v32  ;;  %1927 = vmatmul.mubr.msk.f32.vlgmr.msra.gmra.mrb[32].mxu0 %vm165_vm1, %v1488_v33 }
 0x85e   :  { %1318 = vst.msk [vmem:[%s2508_s15 + $0x30] sm:$0xff] %vm165_vm1, %v1310_v34 }
 0x930   :  { %v1562_v16 = vpop.f32.mrb[32].mxu0 }
 0x931   :  { %v1563_v17 = vadd.f32 %v1562_v16, %v1492_v15  ;;  %v1928_v35 = vpop.f32.mrb[33].mxu0 }
 0x933   :  { %v1566_v36 = vmax.f32 %v1563_v17, 0.0 }
 0x935   :  { %v1571_v26 = vadd.f32 %v1569_v37, %v1566_v36 }
 0x937   :  { %1573 = vst.msk [vmem:[%s2509_s16] sm:$0xf] %vm1572_vm13, %v1571_v26 }

</bundles_post_ra>
